<compile_context>
chip_gen: v5e
topology: v5e:2x2
jax: 0.10.0
libtpu: 0.0.40
codegen_flags: <defaults>
</compile_context>

<pallas_src>
import jax
import jax.numpy as jnp
import numpy as np
from jax.experimental import pallas as pl
from jax.experimental.pallas import tpu as pltpu

INPUT_DIM = 40      # module default input_dim
OUTPUT_DIM = 512    # tdnn1 output_dim
CONTEXT = 5         # tdnn1 context_size
DILATION = 1        # tdnn1 dilation
BN_EPS = 1e-5
TAP_LANES = 128     # per-tap contraction depth (40 zero-padded to 128)


def _round_up(v, m):
    return ((v + m - 1) // m) * m


def _use_per_tap_default():
    """Per-tap accumulation on v6e/v7x (large MXU slack); compact on <= v5."""
    try:
        kind = jax.devices()[0].device_kind.lower()
    except Exception:
        return True
    return not any(tag in kind for tag in ("v2", "v3", "v4", "v5"))


def _epilogue(y, c_ref, o_ref):
    """bias + ReLU + folded eval-mode BatchNorm, cast to the output dtype."""
    bias = c_ref[0:1, :]
    scale = c_ref[1:2, :]
    shift = c_ref[2:3, :]
    y = jnp.maximum(y + bias, 0.0)          # Linear bias + ReLU (f32)
    # Dropout(p=0.5) is identity in eval mode.
    # TODO(synk): training-mode dropout (random mask) / batch-stat BN not implemented.
    o_ref[0] = (y * scale + shift).astype(o_ref.dtype)


def _tdnn_kernel_pertap(xc_ref, xh_ref, w_ref, c_ref, o_ref, xext_ref):
    """v6e / v7x path: 5 accumulating MXU passes of (tile_t,128)@(128,512).

    xc_ref:   (1, tile_t, D)        bf16  current time tile
    xh_ref:   (1, 8, D)             bf16  8-row halo (only first 4 rows used)
    w_ref:    (CONTEXT, 128, N)     bf16  per-tap weight slices, zero-padded 40->128
    c_ref:    (3, N)                f32   packed [bias; bn_scale; bn_shift]
    o_ref:    (1, tile_t, N)        out_dtype
    xext_ref: (tile_t + 8, 128)     bf16  VMEM scratch (tile + halo, lane-padded)
    """
    tile_t, d = xc_ref.shape[1], xc_ref.shape[2]
    rows, lanes = xext_ref.shape
    # Pad lanes are re-zeroed every step: the scratch persists across grid
    # steps and uninitialized bf16 garbage could be NaN/Inf (NaN * 0 != 0).
    xext_ref[:, d:] = jnp.zeros((rows, lanes - d), dtype=xext_ref.dtype)
    # Stage current tile + halo once into the extended buffer.
    xext_ref[0:tile_t, 0:d] = xc_ref[0]
    xext_ref[tile_t:tile_t + 8, 0:d] = xh_ref[0]

    y = jnp.dot(xext_ref[0:tile_t, :], w_ref[0],
                preferred_element_type=jnp.float32)
    for c in range(1, CONTEXT):
        y = y + jnp.dot(xext_ref[c:c + tile_t, :], w_ref[c],
                        preferred_element_type=jnp.float32)
    _epilogue(y, c_ref, o_ref)


def _tdnn_kernel_compact(xc_ref, xh_ref, w_ref, c_ref, o_ref, xext_ref):
    """v5e-and-older path: single compact matmul, ctx (tile_t, 256) @ (256, N).

    w_ref:    (K_pad, N)          bf16  Linear weight^T, zero-padded 200 -> 256
    xext_ref: (tile_t + 8, D)     bf16  VMEM scratch (tile + halo)
    """
    tile_t, d = xc_ref.shape[1], xc_ref.shape[2]
    k_pad = w_ref.shape[0]
    xext_ref[0:tile_t, :] = xc_ref[0]
    xext_ref[tile_t:tile_t + 8, :] = xh_ref[0]

    pieces = [xext_ref[c:c + tile_t, :] for c in range(CONTEXT)]
    pad = k_pad - CONTEXT * d
    if pad > 0:
        pieces.append(jnp.zeros((tile_t, pad), dtype=xext_ref.dtype))
    ctx = jnp.concatenate(pieces, axis=-1)              # (tile_t, K_pad)
    y = jnp.dot(ctx, w_ref[...], preferred_element_type=jnp.float32)
    _epilogue(y, c_ref, o_ref)


def tdnn1_forward(x, weight, bias, bn_gamma, bn_beta, bn_mean, bn_var, *,
                  tile_t=1024, out_dtype=jnp.bfloat16, per_tap=None):
    """x: (B, T, D) f32 -> (B, T - (CONTEXT-1)*DILATION, 512) in out_dtype.

    Eval-mode semantics (Dropout = identity, BatchNorm uses running stats).
    out_dtype=bf16 (default) halves the dominant HBM write; pass jnp.float32
    to match the PyTorch output dtype exactly.
    """
    B, T, D = x.shape
    N = weight.shape[0]
    K = CONTEXT * D
    T_out = T - (CONTEXT - 1) * DILATION
    assert T_out > 0, "sequence too short for the TDNN context"
    if per_tap is None:
        per_tap = _use_per_tap_default()

    # Time tile: multiple of 8 sublanes, clamped to the (padded) output length.
    tile_t = _round_up(max(8, min(tile_t, _round_up(T_out, 8))), 8)
    n_tiles = -(-T_out // tile_t)
    T_out_pad = n_tiles * tile_t
    T_in_pad = T_out_pad + 8          # minimal pad: last tile's 8-row halo block

    # Single fused cast+pad pass over x; bf16 halves this pass AND the per-step
    # input DMA (~80 B/row vs the ~1 KiB/row output write).
    x_bf = jnp.pad(x.astype(jnp.bfloat16), ((0, 0), (0, T_in_pad - T), (0, 0)))

    # Fold eval-mode BatchNorm into per-channel scale/shift; pack with the bias.
    scale = bn_gamma / jnp.sqrt(bn_var + BN_EPS)
    shift = bn_beta - bn_mean * scale
    consts = jnp.stack([bias, scale, shift], axis=0).astype(jnp.float32)  # (3, N)

    if per_tap:
        # (CONTEXT, 128, N): tap c rows [0, D) hold weight[:, c*D:(c+1)*D]^T.
        w_packed = jnp.transpose(weight.reshape(N, CONTEXT, D), (1, 2, 0))
        w_packed = jnp.pad(w_packed, ((0, 0), (0, TAP_LANES - D), (0, 0)))
        w_packed = w_packed.astype(jnp.bfloat16)
        w_spec = pl.BlockSpec((CONTEXT, TAP_LANES, N), lambda b, i: (0, 0, 0))
        kernel = _tdnn_kernel_pertap
        scratch_lanes = TAP_LANES
        k_eff = CONTEXT * TAP_LANES
        w_bytes = CONTEXT * TAP_LANES * N * 2
    else:
        k_pad = _round_up(K, 128)
        w_packed = jnp.pad(weight.T.astype(jnp.bfloat16), ((0, k_pad - K), (0, 0)))
        w_spec = pl.BlockSpec((k_pad, N), lambda b, i: (0, 0))
        kernel = _tdnn_kernel_compact
        scratch_lanes = D
        k_eff = k_pad
        w_bytes = k_pad * N * 2

    halo_blk = tile_t // 8            # halo block index is in units of 8 rows
    out_isz = np.dtype(out_dtype).itemsize

    # Explicit VMEM budget: double-buffered in/out/weight blocks + scratch +
    # headroom for the f32 accumulator / epilogue temporaries.
    vmem_bytes = int(
        2 * (tile_t * D * 2 + 8 * D * 2 + tile_t * N * out_isz + w_bytes)
        + 3 * N * 4
        + (tile_t + 8) * scratch_lanes * 2
        + 4 * tile_t * N * 4
        + (4 << 20))
    vmem_bytes = min(vmem_bytes, 64 << 20)

    cost = pl.CostEstimate(
        flops=2 * B * T_out_pad * N * k_eff,
        transcendentals=0,
        bytes_accessed=int(x_bf.size * 2 + w_bytes + 3 * N * 4
                           + B * T_out_pad * N * out_isz))

    out = pl.pallas_call(
        kernel,
        out_shape=jax.ShapeDtypeStruct((B, T_out_pad, N), out_dtype),
        grid_spec=pltpu.PrefetchScalarGridSpec(
            num_scalar_prefetch=0,
            grid=(B, n_tiles),
            in_specs=[
                pl.BlockSpec((1, tile_t, D), lambda b, i: (b, i, 0)),     # current tile
                pl.BlockSpec((1, 8, D),                                   # 8-row halo
                             lambda b, i, hb=halo_blk: (b, (i + 1) * hb, 0)),
                w_spec,                                                   # resident weight
                pl.BlockSpec((3, N), lambda b, i: (0, 0)),                # bias/scale/shift
            ],
            out_specs=pl.BlockSpec((1, tile_t, N), lambda b, i: (b, i, 0)),
            scratch_shapes=[pltpu.VMEM((tile_t + 8, scratch_lanes), jnp.bfloat16)],
        ),
        compiler_params=pltpu.CompilerParams(
            dimension_semantics=("parallel", "parallel"),
            vmem_limit_bytes=vmem_bytes),
        cost_estimate=cost,
    )(x_bf, x_bf, w_packed, consts)

    # Padded tail rows (T_out..T_out_pad) hold relu(bias)*scale+shift garbage;
    # slice them off so nothing downstream can alias the unsliced buffer.
    return out[:, :T_out, :]


def init_params(key):
    """Deterministic parameter init mirroring the module __init__ shapes.

    Linear(5*40 -> 512): PyTorch-style uniform(+-1/sqrt(fan_in)).
    BatchNorm1d(512): default init (gamma=1, beta=0, running_mean=0, running_var=1).
    """
    k_w, k_b = jax.random.split(key)
    fan_in = CONTEXT * INPUT_DIM
    bound = 1.0 / (fan_in ** 0.5)
    weight = jax.random.uniform(k_w, (OUTPUT_DIM, fan_in), jnp.float32,
                                minval=-bound, maxval=bound)
    bias = jax.random.uniform(k_b, (OUTPUT_DIM,), jnp.float32,
                              minval=-bound, maxval=bound)
    bn_gamma = jnp.ones((OUTPUT_DIM,), jnp.float32)
    bn_beta = jnp.zeros((OUTPUT_DIM,), jnp.float32)
    bn_mean = jnp.zeros((OUTPUT_DIM,), jnp.float32)
    bn_var = jnp.ones((OUTPUT_DIM,), jnp.float32)
    return weight, bias, bn_gamma, bn_beta, bn_mean, bn_var


def _reference_forward(x, weight, bias, bn_gamma, bn_beta, bn_mean, bn_var,
                       *, bf16_inputs=True):
    """Pure-JAX reference of the same eval-mode TDNN block.

    bf16_inputs=True rounds the matmul inputs to bf16 (mirrors the kernel's
    bf16 MXU matmul with f32 accumulation); False is the true-f32 model, from
    which the kernel is expected to drift by O(1e-3..1e-2) absolute.
    """
    T_out = x.shape[1] - (CONTEXT - 1) * DILATION
    cols = [x[:, c * DILATION: c * DILATION + T_out, :] for c in range(CONTEXT)]
    x_unf = jnp.concatenate(cols, axis=-1)
    w = weight
    if bf16_inputs:
        x_unf = x_unf.astype(jnp.bfloat16).astype(jnp.float32)
        w = w.astype(jnp.bfloat16).astype(jnp.float32)
    y = jnp.einsum("btk,nk->btn", x_unf, w,
                   precision=jax.lax.Precision.HIGHEST) + bias
    y = jnp.maximum(y, 0.0)
    scale = bn_gamma / jnp.sqrt(bn_var + BN_EPS)
    shift = bn_beta - bn_mean * scale
    return y * scale + shift


if __name__ == "__main__":
    key = jax.random.PRNGKey(0)
    k_x, k_x2, k_p = jax.random.split(key, 3)
    params = init_params(k_p)

    # Case 1: single time tile, auto matmul mode, default bf16 output.
    B, T = 2, 16
    x = jax.random.normal(k_x, (B, T, INPUT_DIM), dtype=jnp.float32)
    out = jax.block_until_ready(tdnn1_forward(x, *params))
    assert out.shape == (B, T - (CONTEXT - 1) * DILATION, OUTPUT_DIM), out.shape
    assert out.dtype == jnp.bfloat16, out.dtype
    out_f = out.astype(jnp.float32)
    ref_m = _reference_forward(x, *params, bf16_inputs=True)
    err_m = float(jnp.max(jnp.abs(out_f - ref_m)))
    assert err_m < 2e-2, err_m          # bf16-output rounding only
    ref_full = _reference_forward(x, *params, bf16_inputs=False)
    err_full = float(jnp.max(jnp.abs(out_f - ref_full)))
    assert err_full < 5e-2, err_full    # documented bf16 in/out drift vs true f32 model

    # Case 2: multiple time tiles (exercises the 8-row halo path), BOTH matmul
    # layouts (per-tap and compact), f32 output (module-precision dtype).
    B2, T2 = 2, 64
    x2 = jax.random.normal(k_x2, (B2, T2, INPUT_DIM), dtype=jnp.float32)
    ref2 = _reference_forward(x2, *params, bf16_inputs=True)
    for mode in (True, False):
        out2 = jax.block_until_ready(
            tdnn1_forward(x2, *params, tile_t=24, out_dtype=jnp.float32,
                          per_tap=mode))
        assert out2.shape == ref2.shape, (out2.shape, ref2.shape)
        err2 = float(jnp.max(jnp.abs(out2 - ref2)))
        assert err2 < 4e-3, (mode, err2)

    print("KERNEL_OK")
</pallas_src>

<mosaic_0001>
module attributes {stable_mosaic.version = 11 : i64} {
  func.func @_tdnn_kernel_pertap(%arg0: i32, %arg1: i32, %arg2: memref<1x16x40xbf16, #tpu.memory_space<vmem>>, %arg3: memref<1x8x40xbf16, #tpu.memory_space<vmem>>, %arg4: memref<5x128x512xbf16, #tpu.memory_space<vmem>>, %arg5: memref<3x512xf32, #tpu.memory_space<vmem>>, %arg6: memref<1x16x512xbf16, #tpu.memory_space<vmem>>, %arg7: memref<24x128xbf16, #tpu.memory_space<vmem>>) attributes {dimension_semantics = [#tpu.dimension_semantics<parallel>, #tpu.dimension_semantics<parallel>], iteration_bounds = array<i64: 2, 1>, scalar_prefetch = 0 : i64, scratch_operands = 1 : i64, tpu.core_type = #tpu.core_type<tc>, window_params = [{transform_indices = @transform_0, window_bounds = array<i64: 1, 16, 40>}, {transform_indices = @transform_1, window_bounds = array<i64: 1, 8, 40>}, {pipeline_mode = #tpu.pipeline_mode<synchronous>, transform_indices = @transform_2, window_bounds = array<i64: 5, 128, 512>}, {pipeline_mode = #tpu.pipeline_mode<synchronous>, transform_indices = @transform_3, window_bounds = array<i64: 3, 512>}, {transform_indices = @transform_4, window_bounds = array<i64: 1, 16, 512>}]} {
    %cst = arith.constant 0.000000e+00 : bf16
    %0 = vector.broadcast %cst : bf16 to vector<24x88xbf16>
    %c0 = arith.constant 0 : index
    %c40 = arith.constant 40 : index
    %1 = vector.load %arg7[%c0, %c40] : memref<24x128xbf16, #tpu.memory_space<vmem>>, vector<24x88xbf16>
    tpu.vector_store %arg7[%c0, %c40], %0 {strides = array<i32>} : memref<24x128xbf16, #tpu.memory_space<vmem>>, vector<24x88xbf16>,
    %c0_0 = arith.constant 0 : index
    %c0_1 = arith.constant 0 : index
    %c0_2 = arith.constant 0 : index
    %2 = vector.load %arg2[%c0_0, %c0_1, %c0_2] : memref<1x16x40xbf16, #tpu.memory_space<vmem>>, vector<1x16x40xbf16>
    %3 = vector.shape_cast %2 : vector<1x16x40xbf16> to vector<16x40xbf16>
    %c0_3 = arith.constant 0 : index
    %c0_4 = arith.constant 0 : index
    %4 = vector.load %arg7[%c0_3, %c0_4] : memref<24x128xbf16, #tpu.memory_space<vmem>>, vector<16x40xbf16>
    tpu.vector_store %arg7[%c0_3, %c0_4], %3 {strides = array<i32>} : memref<24x128xbf16, #tpu.memory_space<vmem>>, vector<16x40xbf16>,
    %c0_5 = arith.constant 0 : index
    %c0_6 = arith.constant 0 : index
    %c0_7 = arith.constant 0 : index
    %5 = vector.load %arg3[%c0_5, %c0_6, %c0_7] : memref<1x8x40xbf16, #tpu.memory_space<vmem>>, vector<1x8x40xbf16>
    %6 = vector.shape_cast %5 : vector<1x8x40xbf16> to vector<8x40xbf16>
    %c16 = arith.constant 16 : index
    %c0_8 = arith.constant 0 : index
    %7 = vector.load %arg7[%c16, %c0_8] : memref<24x128xbf16, #tpu.memory_space<vmem>>, vector<8x40xbf16>
    tpu.vector_store %arg7[%c16, %c0_8], %6 {strides = array<i32>} : memref<24x128xbf16, #tpu.memory_space<vmem>>, vector<8x40xbf16>,
    %c0_9 = arith.constant 0 : index
    %c0_10 = arith.constant 0 : index
    %8 = vector.load %arg7[%c0_9, %c0_10] : memref<24x128xbf16, #tpu.memory_space<vmem>>, vector<16x128xbf16>
    %c0_11 = arith.constant 0 : index
    %c0_12 = arith.constant 0 : index
    %c0_13 = arith.constant 0 : index
    %9 = vector.load %arg4[%c0_11, %c0_12, %c0_13] : memref<5x128x512xbf16, #tpu.memory_space<vmem>>, vector<1x128x512xbf16>
    %10 = vector.shape_cast %9 : vector<1x128x512xbf16> to vector<128x512xbf16>
    %cst_14 = arith.constant dense<0.000000e+00> : vector<16x512xf32>
    %11 = tpu.matmul %8, %10, %cst_14 {dimension_numbers = #tpu.dot_dimension_numbers<[1], [0], [0], [1], [0, 0, 1, 1], [], []>} : vector<16x128xbf16>, vector<128x512xbf16>, vector<16x512xf32> -> vector<16x512xf32>
    %c1 = arith.constant 1 : index
    %c0_15 = arith.constant 0 : index
    %12 = vector.load %arg7[%c1, %c0_15] : memref<24x128xbf16, #tpu.memory_space<vmem>>, vector<16x128xbf16>
    %c1_16 = arith.constant 1 : index
    %c0_17 = arith.constant 0 : index
    %c0_18 = arith.constant 0 : index
    %13 = vector.load %arg4[%c1_16, %c0_17, %c0_18] : memref<5x128x512xbf16, #tpu.memory_space<vmem>>, vector<1x128x512xbf16>
    %14 = vector.shape_cast %13 : vector<1x128x512xbf16> to vector<128x512xbf16>
    %cst_19 = arith.constant dense<0.000000e+00> : vector<16x512xf32>
    %15 = tpu.matmul %12, %14, %cst_19 {dimension_numbers = #tpu.dot_dimension_numbers<[1], [0], [0], [1], [0, 0, 1, 1], [], []>} : vector<16x128xbf16>, vector<128x512xbf16>, vector<16x512xf32> -> vector<16x512xf32>
    %16 = arith.addf %11, %15 : vector<16x512xf32>
    %c2 = arith.constant 2 : index
    %c0_20 = arith.constant 0 : index
    %17 = vector.load %arg7[%c2, %c0_20] : memref<24x128xbf16, #tpu.memory_space<vmem>>, vector<16x128xbf16>
    %c2_21 = arith.constant 2 : index
    %c0_22 = arith.constant 0 : index
    %c0_23 = arith.constant 0 : index
    %18 = vector.load %arg4[%c2_21, %c0_22, %c0_23] : memref<5x128x512xbf16, #tpu.memory_space<vmem>>, vector<1x128x512xbf16>
    %19 = vector.shape_cast %18 : vector<1x128x512xbf16> to vector<128x512xbf16>
    %cst_24 = arith.constant dense<0.000000e+00> : vector<16x512xf32>
    %20 = tpu.matmul %17, %19, %cst_24 {dimension_numbers = #tpu.dot_dimension_numbers<[1], [0], [0], [1], [0, 0, 1, 1], [], []>} : vector<16x128xbf16>, vector<128x512xbf16>, vector<16x512xf32> -> vector<16x512xf32>
    %21 = arith.addf %16, %20 : vector<16x512xf32>
    %c3 = arith.constant 3 : index
    %c0_25 = arith.constant 0 : index
    %22 = vector.load %arg7[%c3, %c0_25] : memref<24x128xbf16, #tpu.memory_space<vmem>>, vector<16x128xbf16>
    %c3_26 = arith.constant 3 : index
    %c0_27 = arith.constant 0 : index
    %c0_28 = arith.constant 0 : index
    %23 = vector.load %arg4[%c3_26, %c0_27, %c0_28] : memref<5x128x512xbf16, #tpu.memory_space<vmem>>, vector<1x128x512xbf16>
    %24 = vector.shape_cast %23 : vector<1x128x512xbf16> to vector<128x512xbf16>
    %cst_29 = arith.constant dense<0.000000e+00> : vector<16x512xf32>
    %25 = tpu.matmul %22, %24, %cst_29 {dimension_numbers = #tpu.dot_dimension_numbers<[1], [0], [0], [1], [0, 0, 1, 1], [], []>} : vector<16x128xbf16>, vector<128x512xbf16>, vector<16x512xf32> -> vector<16x512xf32>
    %26 = arith.addf %21, %25 : vector<16x512xf32>
    %c4 = arith.constant 4 : index
    %c0_30 = arith.constant 0 : index
    %27 = vector.load %arg7[%c4, %c0_30] : memref<24x128xbf16, #tpu.memory_space<vmem>>, vector<16x128xbf16>
    %c4_31 = arith.constant 4 : index
    %c0_32 = arith.constant 0 : index
    %c0_33 = arith.constant 0 : index
    %28 = vector.load %arg4[%c4_31, %c0_32, %c0_33] : memref<5x128x512xbf16, #tpu.memory_space<vmem>>, vector<1x128x512xbf16>
    %29 = vector.shape_cast %28 : vector<1x128x512xbf16> to vector<128x512xbf16>
    %cst_34 = arith.constant dense<0.000000e+00> : vector<16x512xf32>
    %30 = tpu.matmul %27, %29, %cst_34 {dimension_numbers = #tpu.dot_dimension_numbers<[1], [0], [0], [1], [0, 0, 1, 1], [], []>} : vector<16x128xbf16>, vector<128x512xbf16>, vector<16x512xf32> -> vector<16x512xf32>
    %31 = arith.addf %26, %30 : vector<16x512xf32>
    %c0_35 = arith.constant 0 : index
    %c0_36 = arith.constant 0 : index
    %32 = vector.load %arg5[%c0_35, %c0_36] : memref<3x512xf32, #tpu.memory_space<vmem>>, vector<1x512xf32>
    %c1_37 = arith.constant 1 : index
    %c0_38 = arith.constant 0 : index
    %33 = vector.load %arg5[%c1_37, %c0_38] : memref<3x512xf32, #tpu.memory_space<vmem>>, vector<1x512xf32>
    %c2_39 = arith.constant 2 : index
    %c0_40 = arith.constant 0 : index
    %34 = vector.load %arg5[%c2_39, %c0_40] : memref<3x512xf32, #tpu.memory_space<vmem>>, vector<1x512xf32>
    %35 = vector.broadcast %32 : vector<1x512xf32> to vector<16x512xf32>
    %36 = arith.addf %31, %35 : vector<16x512xf32>
    %cst_41 = arith.constant 0.000000e+00 : f32
    %37 = vector.broadcast %cst_41 : f32 to vector<16x512xf32>
    %38 = arith.maximumf %36, %37 : vector<16x512xf32>
    %39 = vector.broadcast %33 : vector<1x512xf32> to vector<16x512xf32>
    %40 = arith.mulf %38, %39 : vector<16x512xf32>
    %41 = vector.broadcast %34 : vector<1x512xf32> to vector<16x512xf32>
    %42 = arith.addf %40, %41 : vector<16x512xf32>
    %43 = arith.truncf %42 : vector<16x512xf32> to vector<16x512xbf16>
    %c0_42 = arith.constant 0 : index
    %c0_43 = arith.constant 0 : index
    %c0_44 = arith.constant 0 : index
    %44 = vector.load %arg6[%c0_42, %c0_43, %c0_44] : memref<1x16x512xbf16, #tpu.memory_space<vmem>>, vector<1x16x512xbf16>
    %45 = vector.shape_cast %44 : vector<1x16x512xbf16> to vector<16x512xbf16>
    %46 = vector.shape_cast %43 : vector<16x512xbf16> to vector<1x16x512xbf16>
    tpu.vector_store %arg6[%c0_42, %c0_43, %c0_44], %46 {strides = array<i32>} : memref<1x16x512xbf16, #tpu.memory_space<vmem>>, vector<1x16x512xbf16>,
    return
  }
  func.func @transform_0(%arg0: i32, %arg1: i32) -> (i32, i32, i32) {
    %c0_i32 = arith.constant 0 : i32
    %c0_i32_0 = arith.constant 0 : i32
    return %arg0, %arg1, %c0_i32 : i32, i32, i32
  }
  func.func @transform_1(%arg0: i32, %arg1: i32) -> (i32, i32, i32) {
    %c1_i32 = arith.constant 1 : i32
    %0 = arith.addi %arg1, %c1_i32 : i32
    %c2_i32 = arith.constant 2 : i32
    %1 = arith.muli %0, %c2_i32 : i32
    %c0_i32 = arith.constant 0 : i32
    %c0_i32_0 = arith.constant 0 : i32
    return %arg0, %1, %c0_i32 : i32, i32, i32
  }
  func.func @transform_2(%arg0: i32, %arg1: i32) -> (i32, i32, i32) {
    %c0_i32 = arith.constant 0 : i32
    %c0_i32_0 = arith.constant 0 : i32
    %c0_i32_1 = arith.constant 0 : i32
    %c0_i32_2 = arith.constant 0 : i32
    return %c0_i32, %c0_i32_0, %c0_i32_1 : i32, i32, i32
  }
  func.func @transform_3(%arg0: i32, %arg1: i32) -> (i32, i32) {
    %c0_i32 = arith.constant 0 : i32
    %c0_i32_0 = arith.constant 0 : i32
    %c0_i32_1 = arith.constant 0 : i32
    return %c0_i32, %c0_i32_0 : i32, i32
  }
  func.func @transform_4(%arg0: i32, %arg1: i32) -> (i32, i32, i32) {
    %c0_i32 = arith.constant 0 : i32
    %c0_i32_0 = arith.constant 0 : i32
    return %arg0, %arg1, %c0_i32 : i32, i32, i32
  }
}

</mosaic_0001>

<bundles_post_ra>
// kernel: tpu_custom_call.1
= control target key start
LH: loop header
LB: loop body
LE: loop exit
PB: predicated region body
PF: predicated region fallthrough
CT: control target
= control target key end

     0   :  { %s3330_s0 = inlined_call_operand.hbm [shape: bf16[2,24,40], index: 0, kind: input, shape index: {}]   ;;  %s3331_s1 = inlined_call_operand.hbm [shape: bf16[2,24,40], index: 1, kind: input, shape index: {}]   ;;  %s3332_s2 = inlined_call_operand.hbm [shape: bf16[5,128,512], index: 2, kind: input, shape index: {}]   ;;  %s3333_s3 = inlined_call_operand.hbm [shape: f32[3,512], index: 3, kind: input, shape index: {}]   ;;  %s3334_s4 = inlined_call_operand.hbm [shape: bf16[2,16,512], index: 4, kind: output, shape index: {}]  }
   0x1   :  { %3337 = sst [smem:[#allocation19_spill]] %s3330_s0 }
   0x2   :  { %3338 = sst [smem:[#allocation20_spill]] %s3332_s2 }
   0x3   :  { %3339 = sst [smem:[#allocation21_spill]] %s3333_s3 }
   0x4   :  { %9 = vsyncpa [#allocation4], 0 }
   0x5   :  { %11 = vsyncpa [#allocation4 + $0x1], 0 }
   0x6   :  { %12 = vsyncpa [#allocation7], 0 }
   0x7   :  { %14 = vsyncpa [#allocation7 + $0x1], 0 }
   0x8   :  { %15 = vsyncpa [#allocation10], 0 }
   0x9   :  { %16 = vsyncpa [#allocation5], 0 }
   0xa   :  { %18 = vsyncpa [#allocation5 + $0x1], 0  ;;  %s3086_s15 = smov 0   ;;  %s3088_s16 = smov 0  }
   0xb   :  { %s3090_s17 = smov 0   ;;  %s3092_s18 = smov 0  }
   0xc   :  { %s3094_s19 = smov 0   ;;  %s3096_s20 = smov 0  }
   0xd LB: > { %3340 = sst [smem:[#allocation17_spill]] %s3046_s19  ;;  %s3117_s21 = sadd.s32 4294967295, %s3050_s20   ;;  %s3050_s20 = sphi %s3096_s20, %s24_s20   ;;  %s3046_s19 = sphi %s3094_s19, %s3352_s19   ;;  %s3042_s18 = sphi %s3092_s18, %s3351_s18   ;;  %s3038_s17 = sphi %s3090_s17, %s3355_s17   ;;  %s3034_s16 = sphi %s3088_s16, %s3354_s16   ;;  %s3030_s15 = sphi %s3086_s15, %s3353_s15  }
   0xe   : > { %s1910_s22 = sadd.s32 4294967294, %s3050_s20   ;;  %p58_p0 = scmp.ne.s32.totalorder %s3034_s16, %s3030_s15 }
   0xf   : > { %p59_p1 = scmp.eq.s32.totalorder %s3117_s21, 0  ;;  %p158_p2 = scmp.eq.s32.totalorder %s3117_s21, 1 }
  0x10   : > { %p164_p3 = scmp.eq.s32.totalorder %s1910_s22, 1  ;;  %p1911_p5 = scmp.ge.s32.totalorder %s3050_s20, 1 }
  0x11   : > { %p3126_p4 = por %p59_p1, %p58_p0  ;;  %p171_p7 = scmp.lt.s32.totalorder %s3050_s20, 3 }
  0x12   : > { %p3131_p6 = por %p164_p3, %p58_p0  ;;  %s3343_s2 = sld [smem:[#allocation20_spill]] }
  0x13   : > { %p3139_p8 = pnand %p1911_p5, %p171_p7  ;;  %s3052_s29 = smov [#allocation8]  }
  0x14   : > { %s184_s30 = sshll.u32 %s3052_s29, 4  ;;  %p1914_p11 = scmp.ge.s32.totalorder %s3050_s20, 2  ;;  %s185_s30 = int_to_ptr.vmem [resolvable:$true] %s184_s30 }
  0x15   : > { %p2755_p9 = pneg %p3139_p8  ;;  %s3345_s3 = sld [smem:[#allocation21_spill]] }
  0x16   : > { %s3053_s8 = smov 256   ;;  %s3054_s9 = smov 16  }
  0x17   : > { %p2756_p10 = pnand %p2755_p9, %p59_p1  ;;  %s3055_s10 = smov [#allocation9]  }
  0x18   : > { %s182_s27 = sshll.u32 %s3343_s2, 4  ;;  %s199_s11 = sshll.u32 %s3055_s10, 4  ;;  %s183_s27 = int_to_ptr.hbm [resolvable:$true] %s182_s27  ;;  %s200_s11 = int_to_ptr.vmem [resolvable:$true] %s199_s11 }
  0x19   : > { %2758 = dma.hbm_to_vmem [thread:$0]  (!%p2756_p10), %s183_s27, 20480, %s185_s30, [#allocation7], %s3053_s8, %s3053_s8, %s3054_s9  }
  0x1a   : > { %s36_s12 = sadd.s32 1, %s3046_s19  ;;  %s45_s13 = sadd.s32 1, %s3038_s17 }
  0x1b   : > { %s197_s7 = sshll.u32 %s3345_s3, 4  ;;  %p38_p12 = scmp.ge.s32.totalorder %s36_s12, 2  ;;  %s198_s7 = int_to_ptr.hbm [resolvable:$true] %s197_s7 }
  0x1c   : > { %2761 = dma.hbm_to_vmem [thread:$0]  (!%p2756_p10), %s198_s7, 256, %s200_s11, [#allocation10]  }
  0x1d   : > { %p52_p13 = scmp.ne.s32.totalorder %s3038_s17, %s3034_s16  ;;  %p53_p0 = scmp.eq.s32.totalorder %s3050_s20, 0 }
  0x1e   : > { %p2775_p3 = scmp.lt.s32.totalorder %s3050_s20, 2  ;;  %s3357_s12 = smov (%p38_p12, %s36_s12), 0 }
  0x1f   : > { %3346 = sst [smem:[#allocation18_spill]] %s3357_s12  ;;  %p3159_p5 = por %p53_p0, %p52_p13 }
  0x20   : > { %p3165_p7 = por %p158_p2, %p52_p13  ;;  %s40_s25 = ssub.s32 %s3046_s19, %s3357_s12 }
  0x21   : > { %s210_s26 = sand.u32 1, %s3038_s17   ;;  %p43_p9 = scmp.eq.s32.totalorder %s40_s25, 0 }
  0x22   : > { %s1915_s27 = sshll.u32 %s210_s26, 3  ;;  %s2740_s29 = smul.u32 12, %s3046_s19 }
  0x23   : > { %s3174_s30 = scalar_select %p43_p9, %s3038_s17, %s45_s13  }
  0x24   : > { %s3349_s0 = sld [smem:[#allocation19_spill]]  ;;  %s214_s9 = scalar_lea.vmem [#allocation3], %s1915_s27 }
  0x25   : > { %s231_s10 = sshll.u32 %s214_s9, 4  ;;  %p3183_p2 = pnand %p2775_p3, %p3159_p5  ;;  %s232_s10 = int_to_ptr.vmem [resolvable:$true] %s231_s10 }
  0x26   : > { %s241_s25 = sand.u32 1, %s3050_s20   ;;  %s211_s13 = scalar_lea.sflag [#allocation4], %s210_s26 }
  0x27   : > { %s3056_s2 = smov 64   ;;  %s3057_s3 = smov 4  }
  0x28   : > { %s1917_s5 = sshll.u32 %s210_s26, 2  ;;  %s242_s19 = scalar_lea.sflag [#allocation7], %s241_s25 }
  0x2a   : > { %s227_s7 = scalar_lea.hbm %s3349_s0, %s2740_s29  ;;  %s245_s0 = scalar_lea.vmem [#allocation6], %s1917_s5 }
  0x2b   : > { %s229_s8 = sshll.u32 %s227_s7, 4  ;;  %s1822_s7 = scalar_lea.hbm %s3331_s1, %s2740_s29  ;;  %s230_s8 = int_to_ptr.hbm [resolvable:$true] %s229_s8 }
  0x2c   : > { %2765 = dma.hbm_to_vmem [thread:$0]  (!%p3183_p2), %s230_s8, 128, %s232_s10, %s211_s13, %s3056_s2, %s3056_s2, %s3057_s3  }
  0x2d   : > { %s1823_s9 = scalar_lea.hbm %s1822_s7, 8  ;;  %s257_s12 = sshll.u32 %s245_s0, 4  ;;  %s258_s12 = int_to_ptr.vmem [resolvable:$true] %s257_s12 }
  0x2e   : > { %s255_s14 = sshll.u32 %s1823_s9, 4  ;;  %266 = sbr.rel (%p3139_p8) target bundleno = 379 (0x17b), region = 36  ;;  %s256_s14 = int_to_ptr.hbm [resolvable:$true] %s255_s14 }
  0x2f   : > { %2768 = dma.hbm_to_vmem [thread:$0]  (!%p3183_p2), %s256_s14, 64, %s258_s12, %s242_s19  }
  0x30   : > { %s3198_s2 = sand.u32 (!%p3139_p8), 1, %s3034_s16  }
  0x31   : > { %s1920_s3 = sshll.u32 (!%p3139_p8), %s3198_s2, 3  ;;  %s269_s26 = scalar_lea.sflag (!%p3139_p8), [#allocation4], %s3198_s2 }
  0x32   : > { %s3202_s29 = scalar_lea.vmem (!%p3139_p8), [#allocation3], %s1920_s3 }
  0x33   : > { %3009 = dma.done.wait (%p3126_p4), %s269_s26, 128  }
  0x34   : > { %3011 = vsyncadd (%p3126_p4), %s269_s26, 4294967168  ;;  %s278_s0 = sand.u32 1, %s3117_s21   ;;  %s1921_s19 = sshll.u32 %s3198_s2, 2 }
  0x35   : > { %s279_s28 = scalar_lea.sflag [#allocation7], %s278_s0  ;;  %s3210_s12 = scalar_lea.vmem [#allocation6], %s1921_s19 }
  0x36   : > { %3013 = dma.done.wait (%p3126_p4), %s279_s28, 64  }
  0x37   : > { %3015 = vsyncadd (%p3126_p4), %s279_s28, 4294967232 }
  0x38   : > { %3017 = dma.done.wait (%p59_p1), [#allocation7], 20480  }
  0x39   : > { %3019 = vsyncadd (%p59_p1), [#allocation7], 4294946816 }
  0x3a   : > { %3021 = dma.done.wait (%p59_p1), [#allocation10], 256  }
  0x3b   : > { %3023 = vsyncadd (%p59_p1), [#allocation10], 4294967040  ;;  %v2039_v0 = vld [vmem:[#allocation8 + $0x1e0] sm:$0xf]  ;;  %v2637_v1 = vld [vmem:[#allocation8 + $0x1ec] sm:$0xf0] }
  0x3c   : > { %v2635_v2 = vld [vmem:[#allocation8 + $0x1e4] sm:$0xf]  ;;  %v2040_v3 = vor.u32 %v2637_v1, %v2039_v0  ;;  %v2041_v4 = vld [vmem:[#allocation8 + $0x1f0] sm:$0xf0]  ;;  %v2047_v5 = vld [vmem:[#allocation8 + $0x1e8] sm:$0xf] }
  0x3d   : > { %v2638_v6 = vld [vmem:[#allocation8 + $0x1f4] sm:$0xf0]  ;;  %v2044_v7 = vor.u32 %v2635_v2, %v2041_v4  ;;  %v2636_v9 = vld [vmem:[#allocation8 + $0x1ec] sm:$0xf]  ;;  %v2049_v10 = vld [vmem:[#allocation8 + $0x1f8] sm:$0xf0] }
  0x3e   : > { %v2048_v8 = vor.u32 %v2638_v6, %v2047_v5  ;;  %v2023_v11 = vld [vmem:[#allocation8 + $0x1c0] sm:$0xf]  ;;  %595 = vmatpush.bf16.msra.mxu0 %v2040_v3  ;;  %v2052_v12 = vor.u32 %v2636_v9, %v2049_v10  ;;  %v2633_v13 = vld [vmem:[#allocation8 + $0x1cc] sm:$0xf0]  ;;  %v2631_v14 = vld [vmem:[#allocation8 + $0x1c4] sm:$0xf] }
  0x3f   : > { %v2025_v15 = vld [vmem:[#allocation8 + $0x1d0] sm:$0xf0]  ;;  %609 = vmatpush.bf16.msra.mxu1 %v2044_v7  ;;  %v2024_v16 = vor.u32 %v2633_v13, %v2023_v11  ;;  %v2031_v18 = vld [vmem:[#allocation8 + $0x1c8] sm:$0xf]  ;;  %v2634_v19 = vld [vmem:[#allocation8 + $0x1d4] sm:$0xf0] }
  0x40   : > { %623 = vmatpush.bf16.msra.mxu2 %v2048_v8  ;;  %v2028_v17 = vor.u32 %v2631_v14, %v2025_v15  ;;  %v2632_v20 = vld [vmem:[#allocation8 + $0x1cc] sm:$0xf]  ;;  %637 = vmatpush.bf16.msra.mxu3 %v2052_v12  ;;  %v2032_v21 = vor.u32 %v2634_v19, %v2031_v18  ;;  %v2033_v22 = vld [vmem:[#allocation8 + $0x1d8] sm:$0xf0]  ;;  %v2007_v23 = vld [vmem:[#allocation8 + $0x1a0] sm:$0xf] }
  0x41   : > { %v2629_v24 = vld [vmem:[#allocation8 + $0x1ac] sm:$0xf0]  ;;  %v2036_v25 = vor.u32 %v2632_v20, %v2033_v22  ;;  %v2627_v26 = vld [vmem:[#allocation8 + $0x1a4] sm:$0xf]  ;;  %v2009_v27 = vld [vmem:[#allocation8 + $0x1b0] sm:$0xf0] }
  0x42   : > { %v2015_v28 = vld [vmem:[#allocation8 + $0x1a8] sm:$0xf]  ;;  %596 = vmatpush.bf16.msra.mxu0 %v2024_v16  ;;  %v2008_v29 = vor.u32 %v2629_v24, %v2007_v23  ;;  %v2630_v30 = vld [vmem:[#allocation8 + $0x1b4] sm:$0xf0]  ;;  %v2628_v31 = vld [vmem:[#allocation8 + $0x1ac] sm:$0xf]  ;;  %v2012_v33 = vor.u32 %v2627_v26, %v2009_v27 }
  0x43   : > { %v2017_v32 = vld [vmem:[#allocation8 + $0x1b8] sm:$0xf0]  ;;  %610 = vmatpush.bf16.msra.mxu1 %v2028_v17  ;;  %v2016_v34 = vor.u32 %v2630_v30, %v2015_v28  ;;  %v1991_v35 = vld [vmem:[#allocation8 + $0x180] sm:$0xf]  ;;  %v2625_v36 = vld [vmem:[#allocation8 + $0x18c] sm:$0xf0] }
  0x44   : > { %624 = vmatpush.bf16.msra.mxu2 %v2032_v21  ;;  %v2623_v37 = vld [vmem:[#allocation8 + $0x184] sm:$0xf]  ;;  %638 = vmatpush.bf16.msra.mxu3 %v2036_v25  ;;  %v2020_v38 = vor.u32 %v2628_v31, %v2017_v32  ;;  %v1993_v39 = vld [vmem:[#allocation8 + $0x190] sm:$0xf0]  ;;  %v1999_v40 = vld [vmem:[#allocation8 + $0x188] sm:$0xf]  ;;  %v1992_v44 = vor.u32 %v2625_v36, %v1991_v35 }
  0x45   : > { %v2626_v41 = vld [vmem:[#allocation8 + $0x194] sm:$0xf0]  ;;  %v2624_v42 = vld [vmem:[#allocation8 + $0x18c] sm:$0xf]  ;;  %v2001_v43 = vld [vmem:[#allocation8 + $0x198] sm:$0xf0]  ;;  %v1996_v45 = vor.u32 %v2623_v37, %v1993_v39 }
  0x46   : > { %597 = vmatpush.bf16.msra.mxu0 %v2008_v29  ;;  %v2000_v46 = vor.u32 %v2626_v41, %v1999_v40  ;;  %v1975_v47 = vld [vmem:[#allocation8 + $0x160] sm:$0xf]  ;;  %v2621_v48 = vld [vmem:[#allocation8 + $0x16c] sm:$0xf0]  ;;  %v2619_v49 = vld [vmem:[#allocation8 + $0x164] sm:$0xf]  ;;  %v2004_v50 = vor.u32 %v2624_v42, %v2001_v43 }
  0x47   : > { %611 = vmatpush.bf16.msra.mxu1 %v2012_v33  ;;  %v1977_v51 = vld [vmem:[#allocation8 + $0x170] sm:$0xf0]  ;;  %v1983_v52 = vld [vmem:[#allocation8 + $0x168] sm:$0xf]  ;;  %v2622_v53 = vld [vmem:[#allocation8 + $0x174] sm:$0xf0]  ;;  %v1976_v56 = vor.u32 %v2621_v48, %v1975_v47 }
  0x48   : > { %625 = vmatpush.bf16.msra.mxu2 %v2016_v34  ;;  %639 = vmatpush.bf16.msra.mxu3 %v2020_v38  ;;  %v2620_v54 = vld [vmem:[#allocation8 + $0x16c] sm:$0xf]  ;;  %v1985_v55 = vld [vmem:[#allocation8 + $0x178] sm:$0xf0]  ;;  %v1980_v57 = vor.u32 %v2619_v49, %v1977_v51  ;;  %v1984_v58 = vor.u32 %v2622_v53, %v1983_v52  ;;  %v1959_v59 = vld [vmem:[#allocation8 + $0x140] sm:$0xf] }
  0x49   : > { %v2617_v60 = vld [vmem:[#allocation8 + $0x14c] sm:$0xf0]  ;;  %v2615_v61 = vld [vmem:[#allocation8 + $0x144] sm:$0xf]  ;;  %v1988_v62 = vor.u32 %v2620_v54, %v1985_v55  ;;  %v1961_v63 = vld [vmem:[#allocation8 + $0x150] sm:$0xf0] }
  0x4a   : > { %598 = vmatpush.bf16.msra.mxu0 %v1992_v44  ;;  %v1967_v0 = vld [vmem:[#allocation8 + $0x148] sm:$0xf]  ;;  %v2618_v1 = vld [vmem:[#allocation8 + $0x154] sm:$0xf0]  ;;  %v2616_v2 = vld [vmem:[#allocation8 + $0x14c] sm:$0xf]  ;;  %v1960_v4 = vor.u32 %v2617_v60, %v1959_v59  ;;  %v1964_v5 = vor.u32 %v2615_v61, %v1961_v63 }
  0x4b   : > { %612 = vmatpush.bf16.msra.mxu1 %v1996_v45  ;;  %v1969_v3 = vld [vmem:[#allocation8 + $0x158] sm:$0xf0]  ;;  %v1968_v6 = vor.u32 %v2618_v1, %v1967_v0  ;;  %v1943_v7 = vld [vmem:[#allocation8 + $0x120] sm:$0xf]  ;;  %v2613_v8 = vld [vmem:[#allocation8 + $0x12c] sm:$0xf0] }
  0x4c   : > { %626 = vmatpush.bf16.msra.mxu2 %v2000_v46  ;;  %640 = vmatpush.bf16.msra.mxu3 %v2004_v50  ;;  %v2611_v9 = vld [vmem:[#allocation8 + $0x124] sm:$0xf]  ;;  %v1972_v10 = vor.u32 %v2616_v2, %v1969_v3  ;;  %v1945_v11 = vld [vmem:[#allocation8 + $0x130] sm:$0xf0]  ;;  %v1951_v12 = vld [vmem:[#allocation8 + $0x128] sm:$0xf]  ;;  %v1944_v16 = vor.u32 %v2613_v8, %v1943_v7 }
  0x4d   : > { %v2614_v13 = vld [vmem:[#allocation8 + $0x134] sm:$0xf0]  ;;  %v2612_v14 = vld [vmem:[#allocation8 + $0x12c] sm:$0xf]  ;;  %v1953_v15 = vld [vmem:[#allocation8 + $0x138] sm:$0xf0]  ;;  %v1948_v19 = vor.u32 %v2611_v9, %v1945_v11 }
  0x4e   : > { %599 = vmatpush.bf16.msra.mxu0 %v1976_v56  ;;  %v1927_v17 = vld [vmem:[#allocation8 + $0x100] sm:$0xf]  ;;  %v2609_v18 = vld [vmem:[#allocation8 + $0x10c] sm:$0xf0]  ;;  %v1952_v20 = vor.u32 %v2614_v13, %v1951_v12  ;;  %v2607_v21 = vld [vmem:[#allocation8 + $0x104] sm:$0xf]  ;;  %v1956_v24 = vor.u32 %v2612_v14, %v1953_v15 }
  0x4f   : > { %613 = vmatpush.bf16.msra.mxu1 %v1980_v57  ;;  %v1929_v22 = vld [vmem:[#allocation8 + $0x110] sm:$0xf0]  ;;  %v1935_v23 = vld [vmem:[#allocation8 + $0x108] sm:$0xf]  ;;  %v2610_v25 = vld [vmem:[#allocation8 + $0x114] sm:$0xf0]  ;;  %v1928_v31 = vor.u32 %v2609_v18, %v1927_v17 }
  0x50   : > { %627 = vmatpush.bf16.msra.mxu2 %v1984_v58  ;;  %641 = vmatpush.bf16.msra.mxu3 %v1988_v62  ;;  %v2608_v26 = vld [vmem:[#allocation8 + $0x10c] sm:$0xf]  ;;  %v1937_v27 = vld [vmem:[#allocation8 + $0x118] sm:$0xf0]  ;;  %v2171_v28 = vld [vmem:[#allocation8 + $0xe0] sm:$0xf]  ;;  %v1932_v35 = vor.u32 %v2607_v21, %v1929_v22  ;;  %v1936_v36 = vor.u32 %v2610_v25, %v1935_v23 }
  0x51   : > { %v2605_v29 = vld [vmem:[#allocation8 + $0xec] sm:$0xf0]  ;;  %v2603_v30 = vld [vmem:[#allocation8 + $0xe4] sm:$0xf]  ;;  %v2173_v32 = vld [vmem:[#allocation8 + $0xf0] sm:$0xf0]  ;;  %v1940_v39 = vor.u32 %v2608_v26, %v1937_v27 }
  0x52   : > { %600 = vmatpush.bf16.msra.mxu0 %v1960_v4  ;;  %v2179_v33 = vld [vmem:[#allocation8 + $0xe8] sm:$0xf]  ;;  %v2606_v34 = vld [vmem:[#allocation8 + $0xf4] sm:$0xf0]  ;;  %v2604_v37 = vld [vmem:[#allocation8 + $0xec] sm:$0xf]  ;;  %v2172_v40 = vor.u32 %v2605_v29, %v2171_v28  ;;  %v2176_v43 = vor.u32 %v2603_v30, %v2173_v32 }
  0x53   : > { %614 = vmatpush.bf16.msra.mxu1 %v1964_v5  ;;  %v2181_v38 = vld [vmem:[#allocation8 + $0xf8] sm:$0xf0]  ;;  %v2155_v41 = vld [vmem:[#allocation8 + $0xc0] sm:$0xf]  ;;  %v2601_v42 = vld [vmem:[#allocation8 + $0xcc] sm:$0xf0]  ;;  %v2180_v44 = vor.u32 %v2606_v34, %v2179_v33 }
  0x54   : > { %628 = vmatpush.bf16.msra.mxu2 %v1968_v6  ;;  %642 = vmatpush.bf16.msra.mxu3 %v1972_v10  ;;  %vm332_vm0 = vcmask 1043776   ;;  %v2599_v45 = vld [vmem:[#allocation8 + $0xc4] sm:$0xf]  ;;  %v2157_v46 = vld [vmem:[#allocation8 + $0xd0] sm:$0xf0]  ;;  %v2184_v48 = vor.u32 %v2604_v37, %v2181_v38  ;;  %v3058_v54 = vmov 0   ;;  %v2156_v56 = vor.u32 %v2601_v42, %v2155_v41 }
  0x55   : > { %v2163_v47 = vld [vmem:[#allocation8 + $0xc8] sm:$0xf]  ;;  %v2602_v49 = vld [vmem:[#allocation8 + $0xd4] sm:$0xf0]  ;;  %v2600_v50 = vld [vmem:[#allocation8 + $0xcc] sm:$0xf]  ;;  %v2160_v60 = vor.u32 %v2599_v45, %v2157_v46 }
  0x56   : > { %601 = vmatpush.bf16.msra.mxu0 %v1944_v16  ;;  %v2165_v51 = vld [vmem:[#allocation8 + $0xd8] sm:$0xf0]  ;;  %v2139_v52 = vld [vmem:[#allocation8 + $0xa0] sm:$0xf]  ;;  %v2597_v53 = vld [vmem:[#allocation8 + $0xac] sm:$0xf0]  ;;  %v2164_v61 = vor.u32 %v2602_v49, %v2163_v47 }
  0x57   : > { %615 = vmatpush.bf16.msra.mxu1 %v1948_v19  ;;  %333 = vst.msk [vmem:[#allocation2] sm:$0xf] %vm332_vm0, %v3058_v54  ;;  %v336_v55 = vld [vmem:[%s3202_s29] sm:$0xf]  ;;  %v2595_v57 = vld [vmem:[#allocation8 + $0xa4] sm:$0xf]  ;;  %v2168_v63 = vor.u32 %v2600_v50, %v2165_v51  ;;  %v2140_v4 = vor.u32 %v2597_v53, %v2139_v52 }
  0x58   : > { %629 = vmatpush.bf16.msra.mxu2 %v1952_v20  ;;  %643 = vmatpush.bf16.msra.mxu3 %v1956_v24  ;;  %v2141_v58 = vld [vmem:[#allocation8 + $0xb0] sm:$0xf0]  ;;  %334 = vst.msk [vmem:[#allocation2 + $0x4] sm:$0xf] %vm332_vm0, %v3058_v54  ;;  %vm338_vm1 = vcmask 322560   ;;  %vm910_vm3 = vcmask 1046528  }
  0x59   : > { %v337_v59 = vld [vmem:[%s3202_s29 + $0x4] sm:$0xf]  ;;  %335 = vst.msk [vmem:[#allocation2 + $0x8] sm:$0xf] %vm332_vm0, %v3058_v54  ;;  %v341_v62 = vld [vmem:[%s3210_s12] sm:$0xf]  ;;  %v2144_v5 = vor.u32 %v2595_v57, %v2141_v58 }
  0x5a   : > { %602 = vmatpush.bf16.msra.mxu0 %v1928_v31  ;;  %v2147_v0 = vld [vmem:[#allocation8 + $0xa8] sm:$0xf]  ;;  %v2598_v1 = vld [vmem:[#allocation8 + $0xb4] sm:$0xf0]  ;;  %339 = vst.msk [vmem:[#allocation2] sm:$0xf] %vm338_vm1, %v336_v55 }
  0x5b   : > { %616 = vmatpush.bf16.msra.mxu1 %v1932_v35  ;;  %v2596_v2 = vld [vmem:[#allocation8 + $0xac] sm:$0xf]  ;;  %v2149_v3 = vld [vmem:[#allocation8 + $0xb8] sm:$0xf0]  ;;  %340 = vst.msk [vmem:[#allocation2 + $0x4] sm:$0xf] %vm338_vm1, %v337_v59  ;;  %v2148_v6 = vor.u32 %v2598_v1, %v2147_v0 }
  0x5c   : > { %630 = vmatpush.bf16.msra.mxu2 %v1936_v36  ;;  %644 = vmatpush.bf16.msra.mxu3 %v1940_v39  ;;  %342 = vst.msk [vmem:[#allocation2 + $0x8] sm:$0xf] %vm338_vm1, %v341_v62  ;;  %v2123_v7 = vld [vmem:[#allocation8 + $0x80] sm:$0xf]  ;;  %v2593_v8 = vld [vmem:[#allocation8 + $0x8c] sm:$0xf0]  ;;  %v2152_v10 = vor.u32 %v2596_v2, %v2149_v3 }
  0x5d   : > { %v2591_v9 = vld [vmem:[#allocation8 + $0x84] sm:$0xf]  ;;  %v2125_v11 = vld [vmem:[#allocation8 + $0x90] sm:$0xf0]  ;;  %v2131_v12 = vld [vmem:[#allocation8 + $0x88] sm:$0xf]  ;;  %v2124_v16 = vor.u32 %v2593_v8, %v2123_v7 }
  0x5e   : > { %817 = vmatpush.bf16.msrb.mxu0 %v2172_v40  ;;  %v2594_v13 = vld [vmem:[#allocation8 + $0x94] sm:$0xf0]  ;;  %v2592_v14 = vld [vmem:[#allocation8 + $0x8c] sm:$0xf]  ;;  %v2133_v15 = vld [vmem:[#allocation8 + $0x98] sm:$0xf0]  ;;  %v2128_v19 = vor.u32 %v2591_v9, %v2125_v11 }
  0x5f   : > { %831 = vmatpush.bf16.msrb.mxu1 %v2176_v43  ;;  %v2107_v17 = vld [vmem:[#allocation8 + $0x60] sm:$0xf]  ;;  %v2589_v18 = vld [vmem:[#allocation8 + $0x6c] sm:$0xf0]  ;;  %v2132_v20 = vor.u32 %v2594_v13, %v2131_v12  ;;  %v2587_v21 = vld [vmem:[#allocation8 + $0x64] sm:$0xf]  ;;  %v2136_v24 = vor.u32 %v2592_v14, %v2133_v15 }
  0x60   : > { %845 = vmatpush.bf16.msrb.mxu2 %v2180_v44  ;;  %859 = vmatpush.bf16.msrb.mxu3 %v2184_v48  ;;  %v2109_v22 = vld [vmem:[#allocation8 + $0x70] sm:$0xf0]  ;;  %v2115_v23 = vld [vmem:[#allocation8 + $0x68] sm:$0xf]  ;;  %v2590_v26 = vld [vmem:[#allocation8 + $0x74] sm:$0xf0]  ;;  %v2108_v33 = vor.u32 %v2589_v18, %v2107_v17 }
  0x61   : > { %v2588_v27 = vld [vmem:[#allocation8 + $0x6c] sm:$0xf]  ;;  %v2117_v30 = vld [vmem:[#allocation8 + $0x78] sm:$0xf0]  ;;  %v2112_v35 = vor.u32 %v2587_v21, %v2109_v22  ;;  %v2116_v36 = vor.u32 %v2590_v26, %v2115_v23  ;;  %v2091_v37 = vld [vmem:[#allocation8 + $0x40] sm:$0xf] }
  0x62   : > { %818 = vmatpush.bf16.msrb.mxu0 %v2156_v56  ;;  %v3230_v25 = vld [vmem:[#allocation2] sm:$0xff]   ;;  %v2585_v38 = vld [vmem:[#allocation8 + $0x4c] sm:$0xf0]  ;;  %vm421_vm2 = vsmask.f32 7424  ;;  %v2120_v40 = vor.u32 %v2588_v27, %v2117_v30  ;;  %vm1456_vm5 = vcmask 1045504  }
  0x63   : > { %832 = vmatpush.bf16.msrb.mxu1 %v2160_v60  ;;  %v379_v28 = vld [vmem:[#allocation2 + $0x8] sm:$0x1]  ;;  %v425_v29 = vshll.u32 %v3230_v25, 16  ;;  %v423_v32 = vshrl.u32 %v3230_v25, 16  ;;  %v2093_v42 = vld [vmem:[#allocation8 + $0x50] sm:$0xf0]  ;;  %v2092_v46 = vor.u32 %v2585_v38, %v2091_v37 }
  0x64   : > { %846 = vmatpush.bf16.msrb.mxu2 %v2164_v61  ;;  %860 = vmatpush.bf16.msrb.mxu3 %v2168_v63  ;;  %v418_v31 = vunpack.c.l.b16 %v379_v28  ;;  %v2583_v41 = vld [vmem:[#allocation8 + $0x44] sm:$0xf]  ;;  %v2099_v43 = vld [vmem:[#allocation8 + $0x48] sm:$0xf]  ;;  %v2586_v47 = vld [vmem:[#allocation8 + $0x54] sm:$0xf0] }
  0x65   : > { %v427_v34 = vrot.slane %v425_v29, 1  ;;  %v2584_v48 = vld [vmem:[#allocation8 + $0x4c] sm:$0xf]  ;;  %v2101_v49 = vld [vmem:[#allocation8 + $0x58] sm:$0xf0]  ;;  %v2096_v53 = vor.u32 %v2583_v41, %v2093_v42  ;;  %v2100_v54 = vor.u32 %v2586_v47, %v2099_v43  ;;  %s1924_s21 = sshll.u32 %s3198_s2, 5 }
  0x66   : > { %819 = vmatpush.bf16.msrb.mxu0 %v2140_v4  ;;  %v3234_v39 = vpack.c.b16 %v418_v31, %v418_v31  ;;  %v2075_v50 = vld [vmem:[#allocation8 + $0x20] sm:$0xf]  ;;  %v2581_v51 = vld [vmem:[#allocation8 + $0x2c] sm:$0xf0]  ;;  %v2579_v55 = vld [vmem:[#allocation8 + $0x24] sm:$0xf]  ;;  %v2104_v58 = vor.u32 %v2584_v48, %v2101_v49 }
  0x67   : > { %833 = vmatpush.bf16.msrb.mxu1 %v2144_v5  ;;  %v428_v44 = vor.u32 %v427_v34, %v423_v32  ;;  %v2077_v56 = vld [vmem:[#allocation8 + $0x30] sm:$0xf0]  ;;  %v2076_v59 = vor.u32 %v2581_v51, %v2075_v50  ;;  %v2083_v60 = vld [vmem:[#allocation8 + $0x28] sm:$0xf]  ;;  %v2582_v61 = vld [vmem:[#allocation8 + $0x34] sm:$0xf0] }
  0x68   : > { %847 = vmatpush.bf16.msrb.mxu2 %v2148_v6  ;;  %861 = vmatpush.bf16.msrb.mxu3 %v2152_v10  ;;  %v430_v45 = vshll.u32 %v3234_v39, 16  ;;  %v2580_v62 = vld [vmem:[#allocation8 + $0x2c] sm:$0xf]  ;;  %v2085_v63 = vld [vmem:[#allocation8 + $0x38] sm:$0xf0]  ;;  %v2080_v4 = vor.u32 %v2579_v55, %v2077_v56  ;;  %v2084_v5 = vor.u32 %v2582_v61, %v2083_v60  ;;  %s3283_s23 = scalar_lea.vmem [#allocation11], %s1924_s21 }
  0x69   : > { %v2059_v0 = vld [vmem:[#allocation8] sm:$0xf]  ;;  %v2577_v1 = vld [vmem:[#allocation8 + $0xc] sm:$0xf0]  ;;  %v2575_v6 = vld [vmem:[#allocation8 + $0x4] sm:$0xf]  ;;  %v2088_v9 = vor.u32 %v2580_v62, %v2085_v63 }
  0x6a   : > { %820 = vmatpush.bf16.msrb.mxu0 %v2124_v16  ;;  %v432_v52 = vrot.slane %v430_v45, 1  ;;  %v2299_v2 = vld [vmem:[#allocation8 + $0x2e0] sm:$0xf]  ;;  %v2669_v3 = vld [vmem:[#allocation8 + $0x2ec] sm:$0xf0]  ;;  %v2060_v10 = vor.u32 %v2577_v1, %v2059_v0  ;;  %s2735_s8 = sshll.u32 %s3042_s18, 5 }
  0x6b   : > { %834 = vmatpush.bf16.msrb.mxu1 %v2128_v19  ;;  %v2061_v7 = vld [vmem:[#allocation8 + $0x10] sm:$0xf0]  ;;  %v2067_v8 = vld [vmem:[#allocation8 + $0x8] sm:$0xf]  ;;  %v2578_v11 = vld [vmem:[#allocation8 + $0x14] sm:$0xf0]  ;;  %v2300_v14 = vor.u32 %v2669_v3, %v2299_v2  ;;  %s1772_s25 = scalar_lea.hbm %s3334_s4, %s2735_s8 }
  0x6c   : > { %848 = vmatpush.bf16.msrb.mxu2 %v2132_v20  ;;  %862 = vmatpush.bf16.msrb.mxu3 %v2136_v24  ;;  %v433_v57 = vsel %vm421_vm2, %v428_v44, %v432_v52  ;;  %v2576_v12 = vld [vmem:[#allocation8 + $0xc] sm:$0xf]  ;;  %v2069_v13 = vld [vmem:[#allocation8 + $0x18] sm:$0xf0]  ;;  %v2667_v15 = vld [vmem:[#allocation8 + $0x2e4] sm:$0xf]  ;;  %v2064_v21 = vor.u32 %v2575_v6, %v2061_v7  ;;  %v2068_v22 = vor.u32 %v2578_v11, %v2067_v8 }
  0x6d   : > { %603 = vmatmul.bf16.vlgmr.msra.gmra.mxu0 %v433_v57  ;;  %617 = vmatmul.bf16.vlgmr.msra.gmra.mxu1 %v433_v57  ;;  %v2301_v16 = vld [vmem:[#allocation8 + $0x2f0] sm:$0xf0]  ;;  %v2307_v17 = vld [vmem:[#allocation8 + $0x2e8] sm:$0xf]  ;;  %v2670_v18 = vld [vmem:[#allocation8 + $0x2f4] sm:$0xf0]  ;;  %v2072_v26 = vor.u32 %v2576_v12, %v2069_v13 }
  0x6e   : > { %821 = vmatpush.bf16.msrb.mxu0 %v2108_v33  ;;  %631 = vmatmul.bf16.vlgmr.msra.gmra.mxu2 %v433_v57  ;;  %v2668_v19 = vld [vmem:[#allocation8 + $0x2ec] sm:$0xf]  ;;  %v2309_v20 = vld [vmem:[#allocation8 + $0x2f8] sm:$0xf0]  ;;  %v2283_v23 = vld [vmem:[#allocation8 + $0x2c0] sm:$0xf]  ;;  %v2304_v27 = vor.u32 %v2667_v15, %v2301_v16  ;;  %v2308_v28 = vor.u32 %v2670_v18, %v2307_v17 }
  0x6f   : > { %835 = vmatpush.bf16.msrb.mxu1 %v2112_v35  ;;  %645 = vmatmul.bf16.vlgmr.msra.gmra.mxu3 %v433_v57  ;;  %v2665_v24 = vld [vmem:[#allocation8 + $0x2cc] sm:$0xf0]  ;;  %v2312_v29 = vor.u32 %v2668_v19, %v2309_v20  ;;  %v2663_v30 = vld [vmem:[#allocation8 + $0x2c4] sm:$0xf]  ;;  %v2285_v31 = vld [vmem:[#allocation8 + $0x2d0] sm:$0xf0] }
  0x70   : > { %849 = vmatpush.bf16.msrb.mxu2 %v2116_v36  ;;  %863 = vmatpush.bf16.msrb.mxu3 %v2120_v40  ;;  %v2284_v32 = vor.u32 %v2665_v24, %v2283_v23  ;;  %v2574_v33 = vld [vmem:[#allocation2] sm:$0xff]  ;;  %v2291_v34 = vld [vmem:[#allocation8 + $0x2c8] sm:$0xf]  ;;  %v2666_v35 = vld [vmem:[#allocation8 + $0x2d4] sm:$0xf0]  ;;  %v2288_v36 = vor.u32 %v2663_v30, %v2285_v31  ;;  %v2739_v30 = vunpack.c.h.b16 %v3230_v25  ;;  %s1773_s18 = sshll.u32 %s3283_s23, 4  ;;  %s1774_s18 = int_to_ptr.vmem [resolvable:$true] %s1773_s18 }
  0x71   : > { %v2664_v37 = vld [vmem:[#allocation8 + $0x2cc] sm:$0xf]  ;;  %v2293_v38 = vld [vmem:[#allocation8 + $0x2d8] sm:$0xf0]  ;;  %v2267_v40 = vld [vmem:[#allocation8 + $0x2a0] sm:$0xf]  ;;  %v2292_v44 = vor.u32 %v2666_v35, %v2291_v34 }
  0x72   : > { %822 = vmatpush.bf16.msrb.mxu0 %v2092_v46  ;;  %v2661_v41 = vld [vmem:[#allocation8 + $0x2ac] sm:$0xf0]  ;;  %v2659_v42 = vld [vmem:[#allocation8 + $0x2a4] sm:$0xf]  ;;  %v2269_v43 = vld [vmem:[#allocation8 + $0x2b0] sm:$0xf0]  ;;  %v2296_v45 = vor.u32 %v2664_v37, %v2293_v38 }
  0x73   : > { %836 = vmatpush.bf16.msrb.mxu1 %v2096_v53  ;;  %v2275_v46 = vld [vmem:[#allocation8 + $0x2a8] sm:$0xf]  ;;  %v2662_v47 = vld [vmem:[#allocation8 + $0x2b4] sm:$0xf0]  ;;  %v2268_v48 = vor.u32 %v2661_v41, %v2267_v40  ;;  %v2272_v49 = vor.u32 %v2659_v42, %v2269_v43  ;;  %v2660_v50 = vld [vmem:[#allocation8 + $0x2ac] sm:$0xf] }
  0x74   : > { %850 = vmatpush.bf16.msrb.mxu2 %v2100_v54  ;;  %864 = vmatpush.bf16.msrb.mxu3 %v2104_v58  ;;  %v2277_v51 = vld [vmem:[#allocation8 + $0x2b8] sm:$0xf0]  ;;  %v2251_v52 = vld [vmem:[#allocation8 + $0x280] sm:$0xf]  ;;  %v2657_v53 = vld [vmem:[#allocation8 + $0x28c] sm:$0xf0]  ;;  %v2276_v56 = vor.u32 %v2662_v47, %v2275_v46 }
  0x75   : > { %v2655_v54 = vld [vmem:[#allocation8 + $0x284] sm:$0xf]  ;;  %v2253_v55 = vld [vmem:[#allocation8 + $0x290] sm:$0xf0]  ;;  %v2280_v57 = vor.u32 %v2660_v50, %v2277_v51  ;;  %v2259_v58 = vld [vmem:[#allocation8 + $0x288] sm:$0xf]  ;;  %v2252_v60 = vor.u32 %v2657_v53, %v2251_v52 }
  0x76   : > { %823 = vmatpush.bf16.msrb.mxu0 %v2076_v59  ;;  %v2658_v59 = vld [vmem:[#allocation8 + $0x294] sm:$0xf0]  ;;  %v2256_v61 = vor.u32 %v2655_v54, %v2253_v55  ;;  %v2656_v62 = vld [vmem:[#allocation8 + $0x28c] sm:$0xf]  ;;  %v2261_v63 = vld [vmem:[#allocation8 + $0x298] sm:$0xf0] }
  0x77   : > { %837 = vmatpush.bf16.msrb.mxu1 %v2080_v4  ;;  %v2235_v0 = vld [vmem:[#allocation8 + $0x260] sm:$0xf]  ;;  %v2653_v1 = vld [vmem:[#allocation8 + $0x26c] sm:$0xf0]  ;;  %v2651_v2 = vld [vmem:[#allocation8 + $0x264] sm:$0xf]  ;;  %v2260_v4 = vor.u32 %v2658_v59, %v2259_v58 }
  0x78   : > { %851 = vmatpush.bf16.msrb.mxu2 %v2084_v5  ;;  %865 = vmatpush.bf16.msrb.mxu3 %v2088_v9  ;;  %v2237_v3 = vld [vmem:[#allocation8 + $0x270] sm:$0xf0]  ;;  %v2264_v5 = vor.u32 %v2656_v62, %v2261_v63  ;;  %v2243_v6 = vld [vmem:[#allocation8 + $0x268] sm:$0xf]  ;;  %v2654_v7 = vld [vmem:[#allocation8 + $0x274] sm:$0xf0]  ;;  %v2236_v8 = vor.u32 %v2653_v1, %v2235_v0 }
  0x79   : > { %v2240_v9 = vor.u32 %v2651_v2, %v2237_v3  ;;  %v2245_v11 = vld [vmem:[#allocation8 + $0x278] sm:$0xf0]  ;;  %v2219_v12 = vld [vmem:[#allocation8 + $0x240] sm:$0xf]  ;;  %v2649_v13 = vld [vmem:[#allocation8 + $0x24c] sm:$0xf0]  ;;  %v2244_v16 = vor.u32 %v2654_v7, %v2243_v6 }
  0x7a   : > { %824 = vmatpush.bf16.msrb.mxu0 %v2060_v10  ;;  %v2652_v10 = vld [vmem:[#allocation8 + $0x26c] sm:$0xf]  ;;  %v2221_v15 = vld [vmem:[#allocation8 + $0x250] sm:$0xf0]  ;;  %v2227_v18 = vld [vmem:[#allocation8 + $0x248] sm:$0xf] }
  0x7b   : > { %838 = vmatpush.bf16.msrb.mxu1 %v2064_v21  ;;  %v2248_v17 = vor.u32 %v2652_v10, %v2245_v11  ;;  %v2650_v19 = vld [vmem:[#allocation8 + $0x254] sm:$0xf0]  ;;  %v873_v20 = vld [vmem:[#allocation2] sm:$0xe]  ;;  %v2220_v21 = vor.u32 %v2649_v13, %v2219_v12  ;;  %v2648_v23 = vld [vmem:[#allocation8 + $0x24c] sm:$0xf] }
  0x7c   : > { %852 = vmatpush.bf16.msrb.mxu2 %v2068_v22  ;;  %866 = vmatpush.bf16.msrb.mxu3 %v2072_v26  ;;  %v2229_v24 = vld [vmem:[#allocation8 + $0x258] sm:$0xf0]  ;;  %v2203_v26 = vld [vmem:[#allocation8 + $0x220] sm:$0xf]  ;;  %v908_v31 = vunpack.c.l.b16 %v873_v20  ;;  %v2211_v34 = vld [vmem:[#allocation8 + $0x228] sm:$0xf] }
  0x7d   : > { %825 = vmatmul.bf16.vlgmr.msrb.gmra.mxu0 %v2574_v33  ;;  %v2646_v35 = vld [vmem:[#allocation8 + $0x234] sm:$0xf0]  ;;  %v2213_v40 = vld [vmem:[#allocation8 + $0x238] sm:$0xf0]  ;;  %v2187_v41 = vld [vmem:[#allocation8 + $0x200] sm:$0xf] }
  0x7e   : > { %1075 = vmatpush.bf16.msra.mxu0 %v2300_v14  ;;  %839 = vmatmul.bf16.vlgmr.msrb.gmra.mxu1 %v2574_v33  ;;  %v2647_v14 = vld [vmem:[#allocation8 + $0x244] sm:$0xf]  ;;  %v2641_v42 = vld [vmem:[#allocation8 + $0x20c] sm:$0xf0]  ;;  %v2212_v50 = vor.u32 %v2646_v35, %v2211_v34  ;;  %v2195_v52 = vld [vmem:[#allocation8 + $0x208] sm:$0xf] }
  0x7f   : > { %1089 = vmatpush.bf16.msra.mxu1 %v2304_v27  ;;  %853 = vmatmul.bf16.vlgmr.msrb.gmra.mxu2 %v2574_v33  ;;  %v2224_v22 = vor.u32 %v2647_v14, %v2221_v15  ;;  %v2645_v27 = vld [vmem:[#allocation8 + $0x22c] sm:$0xf0]  ;;  %v2639_v43 = vld [vmem:[#allocation8 + $0x204] sm:$0xf]  ;;  %v2642_v53 = vld [vmem:[#allocation8 + $0x214] sm:$0xf0]  ;;  %v2188_v54 = vor.u32 %v2641_v42, %v2187_v41 }
  0x80   : > { %1103 = vmatpush.bf16.msra.mxu2 %v2308_v28  ;;  %1117 = vmatpush.bf16.msra.mxu3 %v2312_v29  ;;  %v2643_v28 = vld [vmem:[#allocation8 + $0x224] sm:$0xf]  ;;  %v2205_v29 = vld [vmem:[#allocation8 + $0x230] sm:$0xf0]  ;;  %v2204_v37 = vor.u32 %v2645_v27, %v2203_v26  ;;  %v2701_v46 = vld [vmem:[#allocation8 + $0x3ec] sm:$0xf0]  ;;  %v2196_v2 = vor.u32 %v2642_v53, %v2195_v52 }
  0x81   : > { %867 = vmatmul.bf16.vlgmr.msrb.gmra.mxu3 %v2574_v33  ;;  %v2232_v33 = vor.u32 %v2648_v23, %v2229_v24  ;;  %v2208_v38 = vor.u32 %v2643_v28, %v2205_v29  ;;  %v2699_v47 = vld [vmem:[#allocation8 + $0x3e4] sm:$0xf]  ;;  %v2435_v58 = vld [vmem:[#allocation8 + $0x3e8] sm:$0xf]  ;;  %v2700_v62 = vld [vmem:[#allocation8 + $0x3ec] sm:$0xf] }
  0x82   : > { %1076 = vmatpush.bf16.msra.mxu0 %v2284_v32  ;;  %v2228_v32 = vor.u32 %v2650_v19, %v2227_v18  ;;  %v2437_v63 = vld [vmem:[#allocation8 + $0x3f8] sm:$0xf0]  ;;  %v912_v1 = vrot.slane %v3234_v39, 1  ;;  %v2419_v10 = vld [vmem:[#allocation8 + $0x3c8] sm:$0xf]  ;;  %s1775_s13 = sshll.u32 %s1772_s25, 4  ;;  %s1776_s13 = int_to_ptr.hbm [resolvable:$true] %s1775_s13 }
  0x83   : > { %1090 = vmatpush.bf16.msra.mxu1 %v2288_v36  ;;  %v2644_v36 = vld [vmem:[#allocation8 + $0x22c] sm:$0xf]  ;;  %v2440_v7 = vor.u32 %v2700_v62, %v2437_v63  ;;  %v2698_v11 = vld [vmem:[#allocation8 + $0x3d4] sm:$0xf0]  ;;  %v2421_v13 = vld [vmem:[#allocation8 + $0x3d8] sm:$0xf0] }
  0x84   : > { %1104 = vmatpush.bf16.msra.mxu2 %v2292_v44  ;;  %1118 = vmatpush.bf16.msra.mxu3 %v2296_v45  ;;  %v2189_v44 = vld [vmem:[#allocation8 + $0x210] sm:$0xf0]  ;;  %v2427_v45 = vld [vmem:[#allocation8 + $0x3e0] sm:$0xf]  ;;  %v2216_v51 = vor.u32 %v2644_v36, %v2213_v40  ;;  %v2696_v12 = vld [vmem:[#allocation8 + $0x3cc] sm:$0xf]  ;;  %v2420_v18 = vor.u32 %v2698_v11, %v2419_v10 }
  0x85   : > { %v2192_v55 = vor.u32 %v2639_v43, %v2189_v44  ;;  %v2428_v59 = vor.u32 %v2701_v46, %v2427_v45  ;;  %v2424_v19 = vor.u32 %v2696_v12, %v2421_v13  ;;  %v2691_v20 = vld [vmem:[#allocation8 + $0x3a4] sm:$0xf]  ;;  %v2694_v23 = vld [vmem:[#allocation8 + $0x3b4] sm:$0xf0]  ;;  %v2692_v24 = vld [vmem:[#allocation8 + $0x3ac] sm:$0xf] }
  0x86   : > { %1077 = vmatpush.bf16.msra.mxu0 %v2268_v48  ;;  %v2429_v48 = vld [vmem:[#allocation8 + $0x3f0] sm:$0xf0]  ;;  %v2405_v26 = vld [vmem:[#allocation8 + $0x3b8] sm:$0xf0]  ;;  %v2379_v29 = vld [vmem:[#allocation8 + $0x380] sm:$0xf] }
  0x87   : > { %1091 = vmatpush.bf16.msra.mxu1 %v2272_v49  ;;  %v3241_v49 = vpack.c.b16 %v2739_v30, %v908_v31  ;;  %v2689_v31 = vld [vmem:[#allocation8 + $0x38c] sm:$0xf0]  ;;  %v2408_v34 = vor.u32 %v2692_v24, %v2405_v26  ;;  %v2381_v35 = vld [vmem:[#allocation8 + $0x390] sm:$0xf0]  ;;  %v2387_v36 = vld [vmem:[#allocation8 + $0x388] sm:$0xf] }
  0x88   : > { %1105 = vmatpush.bf16.msra.mxu2 %v2276_v56  ;;  %1119 = vmatpush.bf16.msra.mxu3 %v2280_v57  ;;  %v2640_v56 = vld [vmem:[#allocation8 + $0x20c] sm:$0xf]  ;;  %v2197_v57 = vld [vmem:[#allocation8 + $0x218] sm:$0xf0]  ;;  %v1139_v41 = vld [vmem:[#allocation2 + $0x8] sm:$0x3]  ;;  %v2380_v42 = vor.u32 %v2689_v31, %v2379_v29 }
  0x89   : > { %v911_v0 = vrot.slane %v3241_v49, 1  ;;  %v2200_v3 = vor.u32 %v2640_v56, %v2197_v57  ;;  %v2389_v40 = vld [vmem:[#allocation8 + $0x398] sm:$0xf0]  ;;  %v2363_v44 = vld [vmem:[#allocation8 + $0x360] sm:$0xf]  ;;  %v1174_v52 = vunpack.c.l.b16 %v1139_v41  ;;  %s1758_s5 = scalar_lea.sflag [#allocation5], %s3198_s2 }
  0x8a   : > { %1078 = vmatpush.bf16.msra.mxu0 %v2252_v60  ;;  %v2432_v60 = vor.u32 %v2699_v47, %v2429_v48  ;;  %v2685_v45 = vld [vmem:[#allocation8 + $0x36c] sm:$0xf0]  ;;  %v2683_v48 = vld [vmem:[#allocation8 + $0x364] sm:$0xf]  ;;  %v2686_v53 = vld [vmem:[#allocation8 + $0x374] sm:$0xf0] }
  0x8b   : > { %1092 = vmatpush.bf16.msra.mxu1 %v2256_v61  ;;  %v2702_v61 = vld [vmem:[#allocation8 + $0x3f4] sm:$0xf0]  ;;  %v913_v39 = vsel %vm910_vm3, %v911_v0, %v912_v1  ;;  %v2347_v56 = vld [vmem:[#allocation8 + $0x340] sm:$0xf]  ;;  %v2681_v57 = vld [vmem:[#allocation8 + $0x34c] sm:$0xf0] }
  0x8c   : > { %1106 = vmatpush.bf16.msra.mxu2 %v2260_v4  ;;  %1120 = vmatpush.bf16.msra.mxu3 %v2264_v5  ;;  %v2411_v4 = vld [vmem:[#allocation8 + $0x3c0] sm:$0xf]  ;;  %v2697_v5 = vld [vmem:[#allocation8 + $0x3cc] sm:$0xf0]  ;;  %v2436_v6 = vor.u32 %v2702_v61, %v2435_v58  ;;  %v2364_v58 = vor.u32 %v2685_v45, %v2363_v44  ;;  %v2349_v61 = vld [vmem:[#allocation8 + $0x350] sm:$0xf0] }
  0x8d   : > { %v2412_v14 = vor.u32 %v2697_v5, %v2411_v4  ;;  %v2355_v62 = vld [vmem:[#allocation8 + $0x348] sm:$0xf]  ;;  %v2682_v1 = vld [vmem:[#allocation8 + $0x354] sm:$0xf0]  ;;  %v3245_v4 = vpack.c.b16 %v1174_v52, %v1174_v52  ;;  %v2331_v5 = vld [vmem:[#allocation8 + $0x320] sm:$0xf] }
  0x8e   : > { %1079 = vmatpush.bf16.msra.mxu0 %v2236_v8  ;;  %v2695_v8 = vld [vmem:[#allocation8 + $0x3c4] sm:$0xf]  ;;  %v2356_v11 = vor.u32 %v2682_v1, %v2355_v62  ;;  %v2339_v13 = vld [vmem:[#allocation8 + $0x328] sm:$0xf]  ;;  %v2674_v31 = vld [vmem:[#allocation8 + $0x314] sm:$0xf0] }
  0x8f   : > { %1093 = vmatpush.bf16.msra.mxu1 %v2240_v9  ;;  %v2413_v9 = vld [vmem:[#allocation8 + $0x3d0] sm:$0xf0]  ;;  %v2323_v29 = vld [vmem:[#allocation8 + $0x308] sm:$0xf]  ;;  %vm1176_vm4 = vsmask.f32 6400 }
  0x90   : > { %1107 = vmatpush.bf16.msra.mxu2 %v2244_v16  ;;  %1121 = vmatpush.bf16.msra.mxu3 %v2248_v17  ;;  %v2416_v15 = vor.u32 %v2695_v8, %v2413_v9  ;;  %v2395_v16 = vld [vmem:[#allocation8 + $0x3a0] sm:$0xf]  ;;  %v2693_v17 = vld [vmem:[#allocation8 + $0x3ac] sm:$0xf0]  ;;  %v2675_v8 = vld [vmem:[#allocation8 + $0x324] sm:$0xf]  ;;  %v2324_v45 = vor.u32 %v2674_v31, %v2323_v29 }
  0x91   : > { %v2396_v27 = vor.u32 %v2693_v17, %v2395_v16  ;;  %v2333_v9 = vld [vmem:[#allocation8 + $0x330] sm:$0xf0]  ;;  %v1178_v16 = vshrl.u32 %v3241_v49, 16  ;;  %v1181_v17 = vshll.u32 %v3241_v49, 16  ;;  %v2730_v62 = vld [vmem:[#allocation8 + $0x4d4] sm:$0xf0] }
  0x92   : > { %1080 = vmatpush.bf16.msra.mxu0 %v2220_v21  ;;  %v2397_v21 = vld [vmem:[#allocation8 + $0x3b0] sm:$0xf0]  ;;  %v2336_v24 = vor.u32 %v2675_v8, %v2333_v9  ;;  %v2723_v9 = vld [vmem:[#allocation8 + $0x4a4] sm:$0xf]  ;;  %v2491_v29 = vld [vmem:[#allocation8 + $0x460] sm:$0xf] }
  0x93   : > { %1094 = vmatpush.bf16.msra.mxu1 %v2224_v22  ;;  %v2403_v22 = vld [vmem:[#allocation8 + $0x3a8] sm:$0xf]  ;;  %v2400_v28 = vor.u32 %v2691_v20, %v2397_v21  ;;  %v2315_v21 = vld [vmem:[#allocation8 + $0x300] sm:$0xf]  ;;  %v1180_v49 = vrot.slane %v1178_v16, 1  ;;  %s2970_s6 = sshra.s32 %s1776_s13, 4  ;;  %s2971_s6 = int_to_ptr.hbm [resolvable:$true] %s2970_s6 }
  0x94   : > { %1108 = vmatpush.bf16.msra.mxu2 %v2228_v32  ;;  %1122 = vmatpush.bf16.msra.mxu3 %v2232_v33  ;;  %v2687_v32 = vld [vmem:[#allocation8 + $0x384] sm:$0xf]  ;;  %v2404_v33 = vor.u32 %v2694_v23, %v2403_v22  ;;  %v2673_v22 = vld [vmem:[#allocation8 + $0x30c] sm:$0xf0]  ;;  %v2557_v41 = vld [vmem:[#allocation8 + $0x4f0] sm:$0xf0]  ;;  %p2977_p10 = scmp.lt.s32.totalorder %s2971_s6, %s3334_s4 }
  0x95   : > { %v2384_v43 = vor.u32 %v2687_v32, %v2381_v35  ;;  %v2671_v23 = vld [vmem:[#allocation8 + $0x304] sm:$0xf]  ;;  %v2672_v32 = vld [vmem:[#allocation8 + $0x30c] sm:$0xf]  ;;  %v2507_v16 = vld [vmem:[#allocation8 + $0x480] sm:$0xf] }
  0x96   : > { %1081 = vmatpush.bf16.msra.mxu0 %v2204_v37  ;;  %v2690_v37 = vld [vmem:[#allocation8 + $0x394] sm:$0xf0]  ;;  %v2717_v31 = vld [vmem:[#allocation8 + $0x46c] sm:$0xf0]  ;;  %s2972_s27 = scalar_lea.hbm %s2971_s6, 32  ;;  %s2976_s14 = scalar_lea.hbm %s3334_s4, 64 }
  0x97   : > { %1095 = vmatpush.bf16.msra.mxu1 %v2208_v38  ;;  %v2688_v38 = vld [vmem:[#allocation8 + $0x38c] sm:$0xf]  ;;  %v2388_v46 = vor.u32 %v2690_v37, %v2387_v36  ;;  %v2325_v36 = vld [vmem:[#allocation8 + $0x318] sm:$0xf0]  ;;  %v2555_v37 = vld [vmem:[#allocation8 + $0x4e0] sm:$0xf]  ;;  %p2973_p1 = scmp.ne.s32.totalorder %s2971_s6, %s2972_s27  ;;  %p2978_p12 = scmp.lt.s32.totalorder %s2976_s14, %s2972_s27 }
  0x98   : > { %1109 = vmatpush.bf16.msra.mxu2 %v2212_v50  ;;  %1123 = vmatpush.bf16.msra.mxu3 %v2216_v51  ;;  %v2392_v47 = vor.u32 %v2688_v38, %v2389_v40  ;;  %v2365_v50 = vld [vmem:[#allocation8 + $0x370] sm:$0xf0]  ;;  %v2371_v51 = vld [vmem:[#allocation8 + $0x368] sm:$0xf]  ;;  %v2733_v38 = vld [vmem:[#allocation8 + $0x4ec] sm:$0xf0] }
  0x99   : > { %v2372_v63 = vor.u32 %v2686_v53, %v2371_v51  ;;  %v2731_v40 = vld [vmem:[#allocation8 + $0x4e4] sm:$0xf]  ;;  %v2556_v53 = vor.u32 %v2733_v38, %v2555_v37  ;;  %v2716_v37 = vld [vmem:[#allocation8 + $0x46c] sm:$0xf]  ;;  %v2501_v38 = vld [vmem:[#allocation8 + $0x478] sm:$0xf0]  ;;  %p2974_p4 = pnand %p2973_p1, %p3165_p7  ;;  %p2979_p13 = por %p2978_p12, %p2977_p10 }
  0x9a   : > { %1082 = vmatpush.bf16.msra.mxu0 %v2188_v54  ;;  %v2684_v54 = vld [vmem:[#allocation8 + $0x36c] sm:$0xf] }
  0x9b   : > { %1096 = vmatpush.bf16.msra.mxu1 %v2192_v55  ;;  %v2373_v55 = vld [vmem:[#allocation8 + $0x378] sm:$0xf0]  ;;  %p2975_p8 = pneg %p2974_p4 }
  0x9c   : > { %1110 = vmatpush.bf16.msra.mxu2 %v2196_v2  ;;  %1124 = vmatpush.bf16.msra.mxu3 %v2200_v3  ;;  %v2376_v0 = vor.u32 %v2684_v54, %v2373_v55  ;;  %v2680_v2 = vld [vmem:[#allocation8 + $0x34c] sm:$0xf]  ;;  %v2357_v3 = vld [vmem:[#allocation8 + $0x358] sm:$0xf0]  ;;  %v2560_v54 = vor.u32 %v2731_v40, %v2557_v41  ;;  %v2539_v55 = vld [vmem:[#allocation8 + $0x4c0] sm:$0xf]  ;;  %v2492_v40 = vor.u32 %v2717_v31, %v2491_v29 }
  0x9d   : > { %1083 = vmatmul.bf16.vlgmr.msra.gmra.mxu0 %v913_v39  ;;  %v2360_v12 = vor.u32 %v2680_v2, %v2357_v3  ;;  %p2980_p0 = pnand %p2979_p13, %p2975_p8 }
  0x9e   : > { %1355 = vmatpush.bf16.msrb.mxu0 %v2428_v59  ;;  %1097 = vmatmul.bf16.vlgmr.msra.gmra.mxu1 %v913_v39  ;;  %v2368_v59 = vor.u32 %v2683_v48, %v2365_v50  ;;  %v2565_v48 = vld [vmem:[#allocation8 + $0x4f8] sm:$0xf0]  ;;  %v2328_v50 = vor.u32 %v2672_v32, %v2325_v36  ;;  %v2718_v36 = vld [vmem:[#allocation8 + $0x474] sm:$0xf0] }
  0x9f   : > { %1369 = vmatpush.bf16.msrb.mxu1 %v2432_v60  ;;  %1111 = vmatmul.bf16.vlgmr.msra.gmra.mxu2 %v913_v39  ;;  %v2679_v60 = vld [vmem:[#allocation8 + $0x344] sm:$0xf] }
  0xa0   : > { %1383 = vmatpush.bf16.msrb.mxu2 %v2436_v6  ;;  %1397 = vmatpush.bf16.msrb.mxu3 %v2440_v7  ;;  %v2348_v6 = vor.u32 %v2681_v57, %v2347_v56  ;;  %v2677_v7 = vld [vmem:[#allocation8 + $0x32c] sm:$0xf0]  ;;  %v2352_v10 = vor.u32 %v2679_v60, %v2349_v61  ;;  %v2541_v60 = vld [vmem:[#allocation8 + $0x4d0] sm:$0xf0]  ;;  %v2547_v61 = vld [vmem:[#allocation8 + $0x4c8] sm:$0xf] }
  0xa1   : > { %1125 = vmatmul.bf16.vlgmr.msra.gmra.mxu3 %v913_v39  ;;  %v2678_v39 = vld [vmem:[#allocation8 + $0x334] sm:$0xf0]  ;;  %v2332_v20 = vor.u32 %v2677_v7, %v2331_v5  ;;  %v2729_v56 = vld [vmem:[#allocation8 + $0x4cc] sm:$0xf0]  ;;  %v2523_v5 = vld [vmem:[#allocation8 + $0x4a0] sm:$0xf]  ;;  %v2548_v7 = vor.u32 %v2730_v62, %v2547_v61 }
  0xa2   : > { %1356 = vmatpush.bf16.msrb.mxu0 %v2412_v14  ;;  %v2676_v14 = vld [vmem:[#allocation8 + $0x32c] sm:$0xf]  ;;  %v2340_v26 = vor.u32 %v2678_v39, %v2339_v13  ;;  %v2540_v2 = vor.u32 %v2729_v56, %v2539_v55  ;;  %v2533_v39 = vld [vmem:[#allocation8 + $0x4b8] sm:$0xf0]  ;;  %v2459_v56 = vld [vmem:[#allocation8 + $0x420] sm:$0xf] }
  0xa3   : > { %1370 = vmatpush.bf16.msrb.mxu1 %v2416_v15  ;;  %v2341_v15 = vld [vmem:[#allocation8 + $0x338] sm:$0xf0]  ;;  %v2724_v13 = vld [vmem:[#allocation8 + $0x4ac] sm:$0xf]  ;;  %v2707_v61 = vld [vmem:[#allocation8 + $0x424] sm:$0xf] }
  0xa4   : > { %1384 = vmatpush.bf16.msrb.mxu2 %v2420_v18  ;;  %1398 = vmatpush.bf16.msrb.mxu3 %v2424_v19  ;;  %v1186_v18 = vshrl.u32 %v3245_v4, 16  ;;  %v1189_v19 = vshll.u32 %v3245_v4, 16  ;;  %v2461_v62 = vld [vmem:[#allocation8 + $0x430] sm:$0xf0] }
  0xa6   : > { %1357 = vmatpush.bf16.msrb.mxu0 %v2396_v27  ;;  %v2344_v27 = vor.u32 %v2676_v14, %v2341_v15  ;;  %v1191_v35 = vrot.slane %v1189_v19, 2  ;;  %v2536_v19 = vor.u32 %v2724_v13, %v2533_v39  ;;  %v2451_v13 = vld [vmem:[#allocation8 + $0x408] sm:$0xf]  ;;  %v2706_v39 = vld [vmem:[#allocation8 + $0x414] sm:$0xf0] }
  0xa7   : > { %1371 = vmatpush.bf16.msrb.mxu1 %v2400_v28  ;;  %v2317_v28 = vld [vmem:[#allocation8 + $0x310] sm:$0xf0]  ;;  %v2452_v25 = vor.u32 %v2706_v39, %v2451_v13 }
  0xa8   : > { %1385 = vmatpush.bf16.msrb.mxu2 %v2404_v33  ;;  %1399 = vmatpush.bf16.msrb.mxu3 %v2408_v34  ;;  %v1183_v33 = vrot.slane %v1181_v17, 2  ;;  %v1188_v34 = vrot.slane %v1186_v18, 1  ;;  %v2320_v44 = vor.u32 %v2671_v23, %v2317_v28  ;;  %v2721_v17 = vld [vmem:[#allocation8 + $0x48c] sm:$0xf0]  ;;  %v2722_v23 = vld [vmem:[#allocation8 + $0x494] sm:$0xf0] }
  0xaa   : > { %1358 = vmatpush.bf16.msrb.mxu0 %v2380_v42  ;;  %v2563_v42 = vld [vmem:[#allocation8 + $0x4e8] sm:$0xf]  ;;  %v1184_v51 = vor.u32 %v1183_v33, %v1180_v49  ;;  %v1192_v52 = vor.u32 %v1191_v35, %v1188_v34  ;;  %v2715_v33 = vld [vmem:[#allocation8 + $0x464] sm:$0xf]  ;;  %v2493_v34 = vld [vmem:[#allocation8 + $0x470] sm:$0xf0] }
  0xab   : > { %1372 = vmatpush.bf16.msrb.mxu1 %v2384_v43  ;;  %v2316_v43 = vor.u32 %v2673_v22, %v2315_v21  ;;  %v2509_v21 = vld [vmem:[#allocation8 + $0x490] sm:$0xf0]  ;;  %v2515_v22 = vld [vmem:[#allocation8 + $0x488] sm:$0xf]  ;;  %v2496_v41 = vor.u32 %v2715_v33, %v2493_v34 }
  0xac   : > { %1386 = vmatpush.bf16.msrb.mxu2 %v2388_v46  ;;  %1400 = vmatpush.bf16.msrb.mxu3 %v2392_v47  ;;  %v2734_v46 = vld [vmem:[#allocation8 + $0x4f4] sm:$0xf0]  ;;  %v2732_v47 = vld [vmem:[#allocation8 + $0x4ec] sm:$0xf]  ;;  %v1193_v1 = vsel %vm1176_vm4, %v1184_v51, %v1192_v52  ;;  %v2516_v32 = vor.u32 %v2722_v23, %v2515_v22  ;;  %v2499_v35 = vld [vmem:[#allocation8 + $0x468] sm:$0xf] }
  0xad   : > { %v2564_v57 = vor.u32 %v2734_v46, %v2563_v42  ;;  %v2475_v42 = vld [vmem:[#allocation8 + $0x440] sm:$0xf]  ;;  %v2504_v46 = vor.u32 %v2716_v37, %v2501_v38  ;;  %v2714_v51 = vld [vmem:[#allocation8 + $0x454] sm:$0xf0]  ;;  %v2712_v52 = vld [vmem:[#allocation8 + $0x44c] sm:$0xf] }
  0xae   : > { %1359 = vmatpush.bf16.msrb.mxu0 %v2364_v58  ;;  %v2568_v58 = vor.u32 %v2732_v47, %v2565_v48  ;;  %v2477_v47 = vld [vmem:[#allocation8 + $0x450] sm:$0xf0]  ;;  %v2483_v48 = vld [vmem:[#allocation8 + $0x448] sm:$0xf] }
  0xaf   : > { %1373 = vmatpush.bf16.msrb.mxu1 %v2368_v59  ;;  %v2727_v59 = vld [vmem:[#allocation8 + $0x4c4] sm:$0xf] }
  0xb0   : > { %1387 = vmatpush.bf16.msrb.mxu2 %v2372_v63  ;;  %1401 = vmatpush.bf16.msrb.mxu3 %v2376_v0  ;;  %v2728_v63 = vld [vmem:[#allocation8 + $0x4cc] sm:$0xf]  ;;  %v2549_v0 = vld [vmem:[#allocation8 + $0x4d8] sm:$0xf0]  ;;  %v2544_v3 = vor.u32 %v2727_v59, %v2541_v60  ;;  %v2484_v59 = vor.u32 %v2714_v51, %v2483_v48 }
  0xb1   : > { %v2552_v8 = vor.u32 %v2728_v63, %v2549_v0  ;;  %v2467_v63 = vld [vmem:[#allocation8 + $0x428] sm:$0xf]  ;;  %v2710_v0 = vld [vmem:[#allocation8 + $0x434] sm:$0xf0] }
  0xb2   : > { %1360 = vmatpush.bf16.msrb.mxu0 %v2348_v6  ;;  %v2725_v6 = vld [vmem:[#allocation8 + $0x4ac] sm:$0xf0] }
  0xb3   : > { %1374 = vmatpush.bf16.msrb.mxu1 %v2352_v10  ;;  %v2525_v10 = vld [vmem:[#allocation8 + $0x4b0] sm:$0xf0]  ;;  %v2524_v14 = vor.u32 %v2725_v6, %v2523_v5  ;;  %v2464_v5 = vor.u32 %v2707_v61, %v2461_v62  ;;  %v2443_v6 = vld [vmem:[#allocation8 + $0x400] sm:$0xf] }
  0xb4   : > { %1388 = vmatpush.bf16.msrb.mxu2 %v2356_v11  ;;  %1402 = vmatpush.bf16.msrb.mxu3 %v2360_v12  ;;  %v2531_v11 = vld [vmem:[#allocation8 + $0x4a8] sm:$0xf]  ;;  %v2726_v12 = vld [vmem:[#allocation8 + $0x4b4] sm:$0xf0]  ;;  %v2528_v15 = vor.u32 %v2723_v9, %v2525_v10  ;;  %v2468_v9 = vor.u32 %v2710_v0, %v2467_v63 }
  0xb5   : > { %v2532_v18 = vor.u32 %v2726_v12, %v2531_v11  ;;  %v2703_v11 = vld [vmem:[#allocation8 + $0x404] sm:$0xf]  ;;  %v2445_v12 = vld [vmem:[#allocation8 + $0x410] sm:$0xf0] }
  0xb6   : > { %1361 = vmatpush.bf16.msrb.mxu0 %v2332_v20  ;;  %v2719_v20 = vld [vmem:[#allocation8 + $0x484] sm:$0xf] }
  0xb7   : > { %1375 = vmatpush.bf16.msrb.mxu1 %v2336_v24  ;;  %v2720_v24 = vld [vmem:[#allocation8 + $0x48c] sm:$0xf]  ;;  %v2512_v28 = vor.u32 %v2719_v20, %v2509_v21 }
  0xb8   : > { %1389 = vmatpush.bf16.msrb.mxu2 %v2340_v26  ;;  %1403 = vmatpush.bf16.msrb.mxu3 %v2344_v27  ;;  %v2517_v26 = vld [vmem:[#allocation8 + $0x498] sm:$0xf0]  ;;  %v2508_v27 = vor.u32 %v2721_v17, %v2507_v16  ;;  %v2448_v17 = vor.u32 %v2703_v11, %v2445_v12  ;;  %v3268_v11 = vld [vmem:[#allocation9 + $0x2] ss:$4 sm:$0xf] }
  0xb9   : > { %v2520_v49 = vor.u32 %v2720_v24, %v2517_v26 }
  0xba   : > { %1362 = vmatpush.bf16.msrb.mxu0 %v2316_v43  ;;  %v2713_v43 = vld [vmem:[#allocation8 + $0x44c] sm:$0xf0] }
  0xbb   : > { %1376 = vmatpush.bf16.msrb.mxu1 %v2320_v44  ;;  %v2711_v44 = vld [vmem:[#allocation8 + $0x444] sm:$0xf] }
  0xbc   : > { %1390 = vmatpush.bf16.msrb.mxu2 %v2324_v45  ;;  %1404 = vmatpush.bf16.msrb.mxu3 %v2328_v50  ;;  %v2500_v45 = vor.u32 %v2718_v36, %v2499_v35  ;;  %v1419_v50 = vld [vmem:[#allocation2] sm:$0xc]  ;;  %v2480_v55 = vor.u32 %v2711_v44, %v2477_v47 }
  0xbd   : > { %1363 = vmatmul.bf16.vlgmr.msrb.gmra.mxu0 %v1193_v1 }
  0xbe   : > { %1621 = vmatpush.bf16.msra.mxu0 %v2556_v53  ;;  %1377 = vmatmul.bf16.vlgmr.msrb.gmra.mxu1 %v1193_v1  ;;  %v2485_v53 = vld [vmem:[#allocation8 + $0x458] sm:$0xf0] }
  0xbf   : > { %1635 = vmatpush.bf16.msra.mxu1 %v2560_v54  ;;  %1391 = vmatmul.bf16.vlgmr.msrb.gmra.mxu2 %v1193_v1  ;;  %v2476_v54 = vor.u32 %v2713_v43, %v2475_v42  ;;  %v2488_v60 = vor.u32 %v2712_v52, %v2485_v53 }
  0xc0   : > { %1649 = vmatpush.bf16.msra.mxu2 %v2564_v57  ;;  %1663 = vmatpush.bf16.msra.mxu3 %v2568_v58  ;;  %v2709_v57 = vld [vmem:[#allocation8 + $0x42c] sm:$0xf0]  ;;  %v1454_v58 = vunpack.c.l.b16 %v1419_v50 }
  0xc1   : > { %1405 = vmatmul.bf16.vlgmr.msrb.gmra.mxu3 %v1193_v1  ;;  %v2708_v1 = vld [vmem:[#allocation8 + $0x42c] sm:$0xf] }
  0xc2   : > { %1622 = vmatpush.bf16.msra.mxu0 %v2540_v2  ;;  %v2469_v2 = vld [vmem:[#allocation8 + $0x438] sm:$0xf0] }
  0xc3   : > { %1636 = vmatpush.bf16.msra.mxu1 %v2544_v3  ;;  %v2460_v3 = vor.u32 %v2709_v57, %v2459_v56  ;;  %v2472_v10 = vor.u32 %v2708_v1, %v2469_v2  ;;  %v3266_v1 = vld [vmem:[#allocation9 + $0x1] ss:$4 sm:$0xf] }
  0xc4   : > { %1650 = vmatpush.bf16.msra.mxu2 %v2548_v7  ;;  %1664 = vmatpush.bf16.msra.mxu3 %v2552_v8  ;;  %v2705_v7 = vld [vmem:[#allocation8 + $0x40c] sm:$0xf0]  ;;  %v1455_v8 = vpack.c.b16 %v2739_v30, %v1454_v58  ;;  %v1716_v13 = vperm.slane %v3266_v1, 0 }
  0xc5   : > { %v2444_v16 = vor.u32 %v2705_v7, %v2443_v6 }
  0xc6   : > { %1623 = vmatpush.bf16.msra.mxu0 %v2524_v14  ;;  %v2704_v14 = vld [vmem:[#allocation8 + $0x40c] sm:$0xf] }
  0xc7   : > { %1637 = vmatpush.bf16.msra.mxu1 %v2528_v15  ;;  %v2453_v15 = vld [vmem:[#allocation8 + $0x418] sm:$0xf0] }
  0xc8   : > { %1651 = vmatpush.bf16.msra.mxu2 %v2532_v18  ;;  %1665 = vmatpush.bf16.msra.mxu3 %v2536_v19  ;;  %v1457_v18 = vrot.slane %v1455_v8, 2  ;;  %v1458_v19 = vrot.slane %v3245_v4, 2  ;;  %v2456_v30 = vor.u32 %v2704_v14, %v2453_v15  ;;  %v1717_v14 = vperm.slane %v3266_v1, 1 }
  0xca   : > { %1624 = vmatpush.bf16.msra.mxu0 %v2508_v27  ;;  %v1459_v20 = vsel %vm1456_vm5, %v1457_v18, %v1458_v19 }
  0xcb   : > { %1638 = vmatpush.bf16.msra.mxu1 %v2512_v28 }
  0xcc   : > { %1652 = vmatpush.bf16.msra.mxu2 %v2516_v32  ;;  %1666 = vmatpush.bf16.msra.mxu3 %v2520_v49 }
  0xce   : > { %1625 = vmatpush.bf16.msra.mxu0 %v2492_v40 }
  0xcf   : > { %1639 = vmatpush.bf16.msra.mxu1 %v2496_v41 }
  0xd0   : > { %1653 = vmatpush.bf16.msra.mxu2 %v2500_v45  ;;  %1667 = vmatpush.bf16.msra.mxu3 %v2504_v46 }
  0xd2   : > { %1626 = vmatpush.bf16.msra.mxu0 %v2476_v54 }
  0xd3   : > { %1640 = vmatpush.bf16.msra.mxu1 %v2480_v55  ;;  %v3258_v55 = vld [vmem:[#allocation9] ss:$4 sm:$0xf] }
  0xd4   : > { %1654 = vmatpush.bf16.msra.mxu2 %v2484_v59  ;;  %1668 = vmatpush.bf16.msra.mxu3 %v2488_v60  ;;  %v1691_v62 = vperm.slane %v3258_v55, 0  ;;  %v1692_v63 = vperm.slane %v3258_v55, 1 }
  0xd6   : > { %1627 = vmatpush.bf16.msra.mxu0 %v2460_v3 }
  0xd7   : > { %1641 = vmatpush.bf16.msra.mxu1 %v2464_v5 }
  0xd8   : > { %1655 = vmatpush.bf16.msra.mxu2 %v2468_v9  ;;  %1669 = vmatpush.bf16.msra.mxu3 %v2472_v10 }
  0xda   : > { %1628 = vmatpush.bf16.msra.mxu0 %v2444_v16 }
  0xdb   : > { %1642 = vmatpush.bf16.msra.mxu1 %v2448_v17 }
  0xdc   : > { %1656 = vmatpush.bf16.msra.mxu2 %v2452_v25  ;;  %1670 = vmatpush.bf16.msra.mxu3 %v2456_v30  ;;  %v1733_v25 = vperm.slane %v3268_v11, 0 }
  0xdd   : > { %1629 = vmatmul.bf16.vlgmr.msra.gmra.mxu0 %v1459_v20 }
  0xde   : > { %1643 = vmatmul.bf16.vlgmr.msra.gmra.mxu1 %v1459_v20 }
  0xdf   : > { %1657 = vmatmul.bf16.vlgmr.msra.gmra.mxu2 %v1459_v20  ;;  %1671 = vmatmul.bf16.vlgmr.msra.gmra.mxu3 %v1459_v20  ;;  %v1734_v20 = vperm.slane %v3268_v11, 1 }
  0xea   : > { %v604_v21 = vpop.f32.mrf.mxu0  ;;  %v618_v22 = vpop.f32.mrf.mxu1 }
  0xf1   : > { %v632_v23 = vpop.f32.mrf.mxu2 }
  0xf2   : > { %v646_v24 = vpop.f32.mrf.mxu3  ;;  %v606_v26 = vpop.f32.mrf.mxu0 }
  0xf3   : > { %v620_v4 = vpop.f32.mrf.mxu1 }
  0xf9   : > { %v634_v27 = vpop.f32.mrf.mxu2 }
  0xfa   : > { %v3254_v28 = vpop.f32.mrf.mxu3  ;;  %v826_v29 = vpop.f32.mrf.mxu0 }
  0xfb   : > { %v840_v31 = vpop.f32.mrf.mxu1  ;;  %v827_v53 = vadd.f32 %v826_v29, %v604_v21 }
  0xfc   : > { %v841_v54 = vadd.f32 %v840_v31, %v618_v22 }
 0x102   : > { %v854_v32 = vpop.f32.mrf.mxu2  ;;  %v828_v33 = vpop.f32.mrf.mxu0 }
 0x103   : > { %v842_v34 = vpop.f32.mrf.mxu1  ;;  %v855_v3 = vadd.f32 %v854_v32, %v632_v23  ;;  %v829_v8 = vadd.f32 %v828_v33, %v606_v26  ;;  %v1693_v23 = vperm.slane %v3258_v55, 2 }
 0x104   : > { %v868_v49 = vpop.f32.mrf.mxu3  ;;  %v843_v9 = vadd.f32 %v842_v34, %v620_v4 }
 0x105   : > { %v869_v7 = vadd.f32 %v868_v49, %v646_v24  ;;  %v1694_v24 = vperm.slane %v3258_v55, 3  ;;  %v1736_v55 = vperm.slane %v3268_v11, 3 }
 0x10a   : > { %v856_v35 = vpop.f32.mrf.mxu2 }
 0x10b   : > { %v857_v10 = vadd.f32 %v856_v35, %v634_v27 }
 0x10c   : > { %v870_v36 = vpop.f32.mrf.mxu3 }
 0x10d   : > { %v871_v49 = vadd.f32 %v870_v36, %v3254_v28 }
 0x11a   : > { %v1084_v37 = vpop.f32.mrf.mxu0 }
 0x11b   : > { %v1098_v38 = vpop.f32.mrf.mxu1  ;;  %v1131_v56 = vadd.f32 %v1084_v37, %v827_v53 }
 0x11c   : > { %v1132_v57 = vadd.f32 %v1098_v38, %v841_v54 }
 0x122   : > { %v1112_v40 = vpop.f32.mrf.mxu2  ;;  %v1086_v42 = vpop.f32.mrf.mxu0 }
 0x123   : > { %v1100_v43 = vpop.f32.mrf.mxu1  ;;  %v1133_v15 = vadd.f32 %v1112_v40, %v855_v3  ;;  %v1135_v17 = vadd.f32 %v1086_v42, %v829_v8 }
 0x124   : > { %v1126_v41 = vpop.f32.mrf.mxu3  ;;  %v1136_v18 = vadd.f32 %v1100_v43, %v843_v9 }
 0x125   : > { %v1134_v16 = vadd.f32 %v1126_v41, %v869_v7 }
 0x12a   : > { %v1114_v44 = vpop.f32.mrf.mxu2 }
 0x12b   : > { %v1137_v33 = vadd.f32 %v1114_v44, %v857_v10  ;;  %v1735_v44 = vperm.slane %v3268_v11, 2 }
 0x12c   : > { %v3256_v45 = vpop.f32.mrf.mxu3 }
 0x13a   : > { %v1364_v46 = vpop.f32.mrf.mxu0 }
 0x13b   : > { %v1378_v47 = vpop.f32.mrf.mxu1  ;;  %v1411_v58 = vadd.f32 %v1364_v46, %v1131_v56 }
 0x13c   : > { %v1412_v59 = vadd.f32 %v1378_v47, %v1132_v57  ;;  %v1718_v47 = vperm.slane %v3266_v1, 2 }
 0x142   : > { %v1392_v48 = vpop.f32.mrf.mxu2  ;;  %v1366_v51 = vpop.f32.mrf.mxu0 }
 0x143   : > { %v1380_v52 = vpop.f32.mrf.mxu1  ;;  %v1413_v21 = vadd.f32 %v1392_v48, %v1133_v15  ;;  %v1415_v26 = vadd.f32 %v1366_v51, %v1135_v17  ;;  %v1138_v51 = vadd.f32 %v3256_v45, %v871_v49 }
 0x144   : > { %v1406_v50 = vpop.f32.mrf.mxu3  ;;  %v1416_v4 = vadd.f32 %v1380_v52, %v1136_v18 }
 0x145   : > { %v1414_v22 = vadd.f32 %v1406_v50, %v1134_v16  ;;  %v1719_v50 = vperm.slane %v3266_v1, 3 }
 0x14a   : > { %v3260_v60 = vpop.f32.mrf.mxu2 }
 0x14c   : > { %v3262_v61 = vpop.f32.mrf.mxu3 }
 0x14d   : > { %v1418_v45 = vadd.f32 %v3262_v61, %v1138_v51 }
 0x15a   : > { %v1630_v0 = vpop.f32.mrf.mxu0 }
 0x15b   : > { %v1644_v2 = vpop.f32.mrf.mxu1  ;;  %v1677_v5 = vadd.f32 %v1630_v0, %v1411_v58  ;;  %v1417_v58 = vadd.f32 %v3260_v60, %v1137_v33 }
 0x15c   : > { %v1678_v6 = vadd.f32 %v1644_v2, %v1412_v59 }
 0x15d   : > { %v1699_v12 = vadd.f32 %v1691_v62, %v1677_v5 }
 0x15e   : > { %v1700_v39 = vadd.f32 %v1692_v63, %v1678_v6 }
 0x15f   : > { %v1707_v19 = vmax.f32 %v1699_v12, 0.0 }
 0x160   : > { %v1708_v30 = vmax.f32 %v1700_v39, 0.0 }
 0x161   : > { %v1724_v27 = vmul.f32 %v1716_v13, %v1707_v19 }
 0x162   : > { %v1725_v29 = vmul.f32 %v1717_v14, %v1708_v30  ;;  %v1658_v31 = vpop.f32.mrf.mxu2  ;;  %v1672_v32 = vpop.f32.mrf.mxu3 }
 0x163   : > { %v1679_v34 = vadd.f32 %v1658_v31, %v1413_v21  ;;  %v1680_v35 = vadd.f32 %v1672_v32, %v1414_v22  ;;  %v1632_v37 = vpop.f32.mrf.mxu0  ;;  %v1646_v38 = vpop.f32.mrf.mxu1  ;;  %v1741_v40 = vadd.f32 %v1733_v25, %v1724_v27 }
 0x164   : > { %v1742_v41 = vadd.f32 %v1734_v20, %v1725_v29  ;;  %v1681_v42 = vadd.f32 %v1632_v37, %v1415_v26  ;;  %v1682_v43 = vadd.f32 %v1646_v38, %v1416_v4 }
 0x165   : > { %v1701_v46 = vadd.f32 %v1693_v23, %v1679_v34  ;;  %v1702_v48 = vadd.f32 %v1694_v24, %v1680_v35 }
 0x166   : > { %v1749_v52 = vpack.c.bf16 %v1742_v41, %v1741_v40  ;;  %v1703_v53 = vadd.f32 %v1691_v62, %v1681_v42  ;;  %v1704_v28 = vadd.f32 %v1692_v63, %v1682_v43 }
 0x167   : > { %v1709_v36 = vmax.f32 %v1701_v46, 0.0  ;;  %v1710_v54 = vmax.f32 %v1702_v48, 0.0 }
 0x168   : > { %1753 = vst [vmem:[%s3283_s23] sm:$0xff] %v1749_v52  ;;  %v1711_v56 = vmax.f32 %v1703_v53, 0.0  ;;  %v1712_v57 = vmax.f32 %v1704_v28, 0.0 }
 0x169   : > { %v1726_v59 = vmul.f32 %v1718_v47, %v1709_v36  ;;  %v1727_v62 = vmul.f32 %v1719_v50, %v1710_v54 }
 0x16a   : > { %v1728_v63 = vmul.f32 %v1716_v13, %v1711_v56  ;;  %v1729_v0 = vmul.f32 %v1717_v14, %v1712_v57  ;;  %v1660_v1 = vpop.f32.mrf.mxu2  ;;  %v1674_v2 = vpop.f32.mrf.mxu3 }
 0x16b   : > { %v1743_v3 = vadd.f32 %v1735_v44, %v1726_v59  ;;  %v1744_v5 = vadd.f32 %v1736_v55, %v1727_v62  ;;  %v1683_v6 = vadd.f32 %v1660_v1, %v1417_v58  ;;  %v1684_v7 = vadd.f32 %v1674_v2, %v1418_v45 }
 0x16c   : > { %v1745_v8 = vadd.f32 %v1733_v25, %v1728_v63  ;;  %v1746_v9 = vadd.f32 %v1734_v20, %v1729_v0 }
 0x16d   : > { %v1750_v10 = vpack.c.bf16 %v1744_v5, %v1743_v3  ;;  %v1705_v60 = vadd.f32 %v1693_v23, %v1683_v6  ;;  %v1706_v11 = vadd.f32 %v1694_v24, %v1684_v7 }
 0x16e   : > { %v1751_v61 = vpack.c.bf16 %v1746_v9, %v1745_v8 }
 0x16f   : > { %1754 = vst [vmem:[%s3283_s23 + $0x8] sm:$0xff] %v1750_v10  ;;  %v1713_v12 = vmax.f32 %v1705_v60, 0.0  ;;  %v1714_v13 = vmax.f32 %v1706_v11, 0.0 }
 0x170   : > { %1755 = vst [vmem:[%s3283_s23 + $0x10] sm:$0xff] %v1751_v61 }
 0x171   : > { %v1730_v39 = vmul.f32 %v1718_v47, %v1713_v12  ;;  %v1731_v14 = vmul.f32 %v1719_v50, %v1714_v13 }
 0x173   : > { %v1747_v15 = vadd.f32 %v1735_v44, %v1730_v39  ;;  %v1748_v16 = vadd.f32 %v1736_v55, %v1731_v14 }
 0x175   : > { %v1752_v17 = vpack.c.bf16 %v1748_v16, %v1747_v15 }
 0x177   : > { %1756 = vst [vmem:[%s3283_s23 + $0x18] sm:$0xff] %v1752_v17 }
 0x178   : > { %2983 = shalt.err (!%p2980_p0)
}
 0x179   : > { %s3059_s2 = smov 256   ;;  %s3060_s29 = smov 16  }
 0x17a   : > { %2753 = dma.vmem_to_hbm [thread:$0]  (%p3165_p7), %s1774_s18, 512, %s1776_s13, %s1758_s5, %s3059_s2, %s3059_s2, %s3060_s29  }
 0x17b PF: > { %s1790_s0 = sand.u32 1, %s3030_s15   ;;  %p2770_p3 = pnand %p1914_p11, %p3131_p6 }
 0x17c   : > { %s1791_s19 = scalar_lea.sflag [#allocation5], %s1790_s0 }
 0x17d   : > { %p2771_p5 = pneg %p2770_p3 }
 0x17f   : > { %3025 = dma.done.wait (%p2771_p5), %s1791_s19, 512  }
 0x180   : > { %3027 = vsyncadd (%p2771_p5), %s1791_s19, 4294966784  ;;  %s24_s20 = sadd.s32 1, %s3050_s20   ;;  %s3351_s18 = sld [smem:[#allocation17_spill]] }
 0x181   : > { %p21_p9 = scmp.ge.s32.totalorder %s24_s20, 4   ;;  %s3352_s19 = sld [smem:[#allocation18_spill]] }
 0x182   : > { %s3353_s15 = smov %s3034_s16  ;;  %s3354_s16 = smov %s3038_s17 }
 0x183   : > { %s3355_s17 = smov %s3174_s30  ;;  %23 = sbr.rel (!%p21_p9) target bundleno = 13 (0xd), region = 108 }
 0x188   :  { %1797 = vsyncpa [#allocation4], 1 }
 0x189   :  { %1799 = vsyncpa [#allocation4 + $0x1], 1 }
 0x18a   :  { %1800 = vsyncpa [#allocation7], 1 }
 0x18b   :  { %1802 = vsyncpa [#allocation7 + $0x1], 1 }
 0x18c   :  { %1803 = vsyncpa [#allocation10], 1 }
 0x18d   :  { %1804 = vsyncpa [#allocation5], 1 }
 0x18e   :  { %1806 = vsyncpa [#allocation5 + $0x1], 1 }

</bundles_post_ra>
